<compile_context>
chip_gen: v7x
topology: tpu7x:2x2x1
jax: 0.10.0
libtpu: 0.0.40
codegen_flags: <defaults>
</compile_context>

<pallas_src>
import jax
import jax.numpy as jnp
from jax import lax
from jax.experimental import pallas as pl
from jax.experimental.pallas import tpu as pltpu


def _round_up(x, m):
    return ((x + m - 1) // m) * m


def _vmem_capacity_bytes():
    try:
        return int(pltpu.get_tpu_info().vmem_capacity_bytes)
    except Exception:
        return 64 * 1024 * 1024  # conservative (v7x per-TensorCore)


def _pad_gate_blocks(a, H, H_pad, axis=0):
    """Pad each of the 4 LSTM gate blocks (size H along `axis`) to H_pad with zeros."""
    if H_pad == H:
        return a
    parts = jnp.split(a, 4, axis=axis)
    pad_width = [(0, 0)] * a.ndim
    pad_width[axis] = (0, H_pad - H)
    return jnp.concatenate([jnp.pad(p, pad_width) for p in parts], axis=axis)


def _sigmoid_via_tanh(x):
    # sigmoid(x) = 0.5*tanh(0.5*x) + 0.5  -> single EUP push instead of exp + recip.
    return 0.5 * jnp.tanh(0.5 * x) + 0.5


def _make_lstm_kernel(time_chunk, hidden_pad, seq_len, collect_all, needs_mask, unroll):
    """Chunked LSTM recurrence kernel.

    Grid: (batch_blocks [parallel], time_chunks [arbitrary]).
    xproj_ref : (TC, BB, 4H) bf16   precomputed x_t @ W_ih^T + (b_ih + b_hh)
    whh_ref   : (H, 4H)      bf16   W_hh^T, VMEM-resident across chunks
    out_ref   : (TC, BB, H)  f32    per-step hidden states   (collect_all=True)
                (BB, H)      f32    final hidden state only  (collect_all=False)
    h_scr/c_scr : (BB, H)    f32    recurrent state carried across the chunk axis
    """
    H = hidden_pad

    def kernel(xproj_ref, whh_ref, out_ref, h_scr, c_scr):
        chunk = pl.program_id(1)

        @pl.when(chunk == 0)          # reset per batch block (chunk axis innermost)
        def _():
            h_scr[...] = jnp.zeros_like(h_scr)
            c_scr[...] = jnp.zeros_like(c_scr)

        t0 = chunk * time_chunk

        def step(t, carry):
            def body():
                h_b = h_scr[...].astype(jnp.bfloat16)
                # Only the recurrent matmul is on the serial path; input projection
                # (and both biases) were precomputed outside the kernel.
                gates = xproj_ref[t].astype(jnp.float32) + jnp.dot(
                    h_b, whh_ref[...], preferred_element_type=jnp.float32)  # (BB, 4H)

                i_g = _sigmoid_via_tanh(gates[:, 0 * H:1 * H])
                f_g = _sigmoid_via_tanh(gates[:, 1 * H:2 * H])
                g_g = jnp.tanh(gates[:, 2 * H:3 * H])
                o_g = _sigmoid_via_tanh(gates[:, 3 * H:4 * H])

                c_new = f_g * c_scr[...] + i_g * g_g
                h_new = o_g * jnp.tanh(c_new)

                h_scr[...] = h_new
                c_scr[...] = c_new
                if collect_all:
                    out_ref[t] = h_new            # lane-dense (BB, H_pad) store

            if needs_mask:
                pl.when(t0 + t < seq_len)(body)   # skip padded timesteps
            else:
                body()
            return carry

        lax.fori_loop(0, time_chunk, step, 0, unroll=unroll)

        if not collect_all:
            @pl.when(chunk == pl.num_programs(1) - 1)
            def _():
                out_ref[...] = h_scr[...]

    return kernel


def lstm_model_forward(x, params, use_window, time_chunk=None, batch_block=None):
    """x: (B, T, D) float32 (batch_first, like the PyTorch module)."""
    w_ih, w_hh, b_ih, b_hh, w_out, b_out = params
    B, T, D = x.shape
    H = w_hh.shape[1]

    # ---- shape padding: H per-gate to 128-lane multiple, B to bf16 sublane tile --
    H_pad = _round_up(H, 128)
    B_pad = _round_up(B, 16)
    if batch_block is None:
        batch_block = min(B_pad, 128)
    B_pad = _round_up(B_pad, batch_block)
    n_bblocks = B_pad // batch_block

    w_ih_p = _pad_gate_blocks(w_ih, H, H_pad, axis=0)                 # (4H_pad, D)
    w_hh_p = _pad_gate_blocks(w_hh, H, H_pad, axis=0)                 # (4H_pad, H)
    w_hh_p = jnp.pad(w_hh_p, ((0, 0), (0, H_pad - H)))                # (4H_pad, H_pad)
    b_p = _pad_gate_blocks(b_ih + b_hh, H, H_pad, axis=0)             # (4H_pad,)
    w_out_p = jnp.pad(w_out, ((0, 0), (0, H_pad - H)))                # (1, H_pad)

    # ---- one big MXU matmul for the input projection of ALL timesteps -----------
    x_p = jnp.pad(x, ((0, B_pad - B), (0, 0), (0, 0)))                # (B_pad, T, D)
    x_proj = jnp.einsum("btd,gd->tbg", x_p, w_ih_p,
                        preferred_element_type=jnp.float32)           # (T, B_pad, 4H_pad)
    x_proj = (x_proj + b_p.reshape(1, 1, 4 * H_pad)).astype(jnp.bfloat16)
    whh_t = jnp.transpose(w_hh_p).astype(jnp.bfloat16)                # (H_pad, 4H_pad)

    # ---- VMEM-budget-aware time chunking (v7x: 64 MiB, v5e/v6e: 128 MiB) --------
    vmem_cap = _vmem_capacity_bytes()
    if time_chunk is None:
        budget = int(vmem_cap * 0.55)
        fixed = 2 * (H_pad * 4 * H_pad * 2) + 2 * (batch_block * H_pad * 4)
        per_step = 2 * (batch_block * 4 * H_pad * 2) + 2 * (batch_block * H_pad * 4)
        time_chunk = int(max(8, min(512, (budget - fixed) // per_step)))
    time_chunk = int(max(1, min(time_chunk, T)))
    T_pad = _round_up(T, time_chunk)
    n_chunks = T_pad // time_chunk
    needs_mask = (T_pad != T)
    if needs_mask:
        x_proj = jnp.pad(x_proj, ((0, T_pad - T), (0, 0), (0, 0)))
    unroll = int(min(8, time_chunk))
    vmem_limit = int(vmem_cap * 0.75)

    collect_all = not use_window
    if collect_all:
        out_shape = jax.ShapeDtypeStruct((T_pad, B_pad, H_pad), jnp.float32)
        out_spec = pl.BlockSpec((time_chunk, batch_block, H_pad),
                                lambda bb, c: (c, bb, 0))
    else:
        out_shape = jax.ShapeDtypeStruct((B_pad, H_pad), jnp.float32)
        out_spec = pl.BlockSpec((batch_block, H_pad), lambda bb, c: (bb, 0))

    hs = pl.pallas_call(
        _make_lstm_kernel(time_chunk, H_pad, T, collect_all, needs_mask, unroll),
        out_shape=out_shape,
        grid_spec=pltpu.PrefetchScalarGridSpec(
            num_scalar_prefetch=0,
            grid=(n_bblocks, n_chunks),
            in_specs=[
                pl.BlockSpec((time_chunk, batch_block, 4 * H_pad),
                             lambda bb, c: (c, bb, 0)),               # x_proj (bf16)
                pl.BlockSpec((H_pad, 4 * H_pad), lambda bb, c: (0, 0)),  # W_hh^T (bf16)
            ],
            out_specs=out_spec,
            scratch_shapes=[
                pltpu.VMEM((batch_block, H_pad), jnp.float32),        # h state
                pltpu.VMEM((batch_block, H_pad), jnp.float32),        # c state
            ],
        ),
        compiler_params=pltpu.CompilerParams(
            dimension_semantics=("parallel", "arbitrary"),            # batch x time
            vmem_limit_bytes=vmem_limit,
        ),
    )(x_proj, whh_t)

    # ---- output Linear applied once, outside the kernel --------------------------
    if use_window:
        # hs: (B_pad, H_pad) = h_{T-1}; padded h entries are exactly 0.
        return hs[:B, :] @ jnp.transpose(w_out_p) + b_out             # (B, 1)
    else:
        # Contract H away directly -> (B_pad, T_pad); strip padding; squeeze to
        # match PyTorch .squeeze() semantics.
        pred = jnp.einsum("tbh,h->bt", hs, w_out_p[0]) + b_out[0]
        return jnp.squeeze(pred[:B, :T])


def lstm_model_reference(x, params, use_window):
    """Pure-JAX f32 reference matching PyTorch nn.LSTM + Linear."""
    w_ih, w_hh, b_ih, b_hh, w_out, b_out = params
    B, T, D = x.shape
    H = w_hh.shape[1]

    def step(carry, xt):
        h, c = carry
        gates = xt @ w_ih.T + b_ih + h @ w_hh.T + b_hh
        i, f, g, o = jnp.split(gates, 4, axis=-1)
        i, f, o = jax.nn.sigmoid(i), jax.nn.sigmoid(f), jax.nn.sigmoid(o)
        g = jnp.tanh(g)
        c = f * c + i * g
        h = o * jnp.tanh(c)
        return (h, c), h

    init = (jnp.zeros((B, H), jnp.float32), jnp.zeros((B, H), jnp.float32))
    _, hs = lax.scan(step, init, jnp.swapaxes(x, 0, 1))
    hs = jnp.swapaxes(hs, 0, 1)                                       # (B, T, H)
    pred = hs @ w_out.T + b_out                                       # (B, T, 1)
    if use_window:
        return pred[:, -1, :]
    return jnp.squeeze(pred)


def init_params(key, input_dim, hidden_dim):
    """Deterministic init mimicking PyTorch uniform(-1/sqrt(H), 1/sqrt(H))."""
    k = 1.0 / jnp.sqrt(jnp.float32(hidden_dim))
    ks = jax.random.split(key, 6)
    w_ih = jax.random.uniform(ks[0], (4 * hidden_dim, input_dim), jnp.float32, -k, k)
    w_hh = jax.random.uniform(ks[1], (4 * hidden_dim, hidden_dim), jnp.float32, -k, k)
    b_ih = jax.random.uniform(ks[2], (4 * hidden_dim,), jnp.float32, -k, k)
    b_hh = jax.random.uniform(ks[3], (4 * hidden_dim,), jnp.float32, -k, k)
    w_out = jax.random.uniform(ks[4], (1, hidden_dim), jnp.float32, -k, k)
    b_out = jax.random.uniform(ks[5], (1,), jnp.float32, -k, k)
    return (w_ih, w_hh, b_ih, b_hh, w_out, b_out)


if __name__ == "__main__":
    B, T, D, H = 4, 8, 16, 32
    key = jax.random.PRNGKey(0)
    kx, kp = jax.random.split(key)
    x = jax.random.normal(kx, (B, T, D), jnp.float32)
    params = init_params(kp, D, H)

    # use_window = False path: (B, T), single time chunk
    pred_all = jax.block_until_ready(lstm_model_forward(x, params, use_window=False))
    # use_window = True path: (B, 1)
    pred_last = jax.block_until_ready(lstm_model_forward(x, params, use_window=True))
    # Exercise the chunked grid + padded/masked-tail path (time_chunk=3 -> T_pad=9).
    pred_all_chunked = jax.block_until_ready(
        lstm_model_forward(x, params, use_window=False, time_chunk=3))
    pred_last_chunked = jax.block_until_ready(
        lstm_model_forward(x, params, use_window=True, time_chunk=3))

    ref_all = lstm_model_reference(x, params, use_window=False)
    ref_last = lstm_model_reference(x, params, use_window=True)

    assert pred_all.shape == (B, T)
    assert pred_last.shape == (B, 1)
    # bf16 MXU operands -> relaxed tolerance vs the f32 reference.
    tol = dict(atol=2e-2, rtol=2e-2)
    assert jnp.allclose(pred_all, ref_all, **tol)
    assert jnp.allclose(pred_last, ref_last, **tol)
    assert jnp.allclose(pred_all_chunked, ref_all, **tol)
    assert jnp.allclose(pred_last_chunked, ref_last, **tol)

    print("KERNEL_OK")
</pallas_src>

<mosaic_0001>
module attributes {stable_mosaic.version = 11 : i64} {
  func.func @kernel(%arg0: i32, %arg1: i32, %arg2: memref<8x16x512xbf16, #tpu.memory_space<vmem>>, %arg3: memref<128x512xbf16, #tpu.memory_space<vmem>>, %arg4: memref<8x16x128xf32, #tpu.memory_space<vmem>>, %arg5: memref<16x128xf32, #tpu.memory_space<vmem>>, %arg6: memref<16x128xf32, #tpu.memory_space<vmem>>) attributes {dimension_semantics = [#tpu.dimension_semantics<parallel>, #tpu.dimension_semantics<arbitrary>], iteration_bounds = array<i64: 1, 1>, scalar_prefetch = 0 : i64, scratch_operands = 2 : i64, tpu.core_type = #tpu.core_type<tc>, window_params = [{transform_indices = @transform_0, window_bounds = array<i64: 8, 16, 512>}, {pipeline_mode = #tpu.pipeline_mode<synchronous>, transform_indices = @transform_1, window_bounds = array<i64: 128, 512>}, {transform_indices = @transform_2, window_bounds = array<i64: 8, 16, 128>}]} {
    %c0_i32 = arith.constant 0 : i32
    %0 = arith.cmpi eq, %arg1, %c0_i32 : i32
    %1 = arith.extui %0 : i1 to i32
    %c0_i32_0 = arith.constant 0 : i32
    %2 = arith.cmpi ne, %1, %c0_i32_0 : i32
    scf.if %2 {
      %cst_192 = arith.constant 0.000000e+00 : f32
      %379 = vector.broadcast %cst_192 : f32 to vector<16x128xf32>
      %c0_193 = arith.constant 0 : index
      %c0_194 = arith.constant 0 : index
      %380 = vector.load %arg5[%c0_193, %c0_194] : memref<16x128xf32, #tpu.memory_space<vmem>>, vector<16x128xf32>
      tpu.vector_store %arg5[%c0_193, %c0_194], %379 {strides = array<i32>} : memref<16x128xf32, #tpu.memory_space<vmem>>, vector<16x128xf32>,
      %cst_195 = arith.constant 0.000000e+00 : f32
      %381 = vector.broadcast %cst_195 : f32 to vector<16x128xf32>
      %c0_196 = arith.constant 0 : index
      %c0_197 = arith.constant 0 : index
      %382 = vector.load %arg6[%c0_196, %c0_197] : memref<16x128xf32, #tpu.memory_space<vmem>>, vector<16x128xf32>
      tpu.vector_store %arg6[%c0_196, %c0_197], %381 {strides = array<i32>} : memref<16x128xf32, #tpu.memory_space<vmem>>, vector<16x128xf32>,
    } else {
    }
    %c0_i32_1 = arith.constant 0 : i32
    %c0 = arith.constant 0 : index
    %c0_2 = arith.constant 0 : index
    %3 = vector.load %arg5[%c0, %c0_2] : memref<16x128xf32, #tpu.memory_space<vmem>>, vector<16x128xf32>
    %4 = arith.truncf %3 : vector<16x128xf32> to vector<16x128xbf16>
    %5 = arith.index_cast %c0_i32_1 : i32 to index
    %c0_3 = arith.constant 0 : index
    %c0_4 = arith.constant 0 : index
    %6 = vector.load %arg2[%5, %c0_3, %c0_4] : memref<8x16x512xbf16, #tpu.memory_space<vmem>>, vector<1x16x512xbf16>
    %7 = vector.shape_cast %6 : vector<1x16x512xbf16> to vector<16x512xbf16>
    %8 = arith.extf %7 : vector<16x512xbf16> to vector<16x512xf32>
    %c0_5 = arith.constant 0 : index
    %c0_6 = arith.constant 0 : index
    %9 = vector.load %arg3[%c0_5, %c0_6] : memref<128x512xbf16, #tpu.memory_space<vmem>>, vector<128x512xbf16>
    %cst = arith.constant dense<0.000000e+00> : vector<16x512xf32>
    %10 = tpu.matmul %4, %9, %cst {dimension_numbers = #tpu.dot_dimension_numbers<[1], [0], [0], [1], [0, 0, 1, 1], [], []>} : vector<16x128xbf16>, vector<128x512xbf16>, vector<16x512xf32> -> vector<16x512xf32>
    %11 = arith.addf %8, %10 : vector<16x512xf32>
    %12 = vector.extract_strided_slice %11 {offsets = [0, 0], sizes = [16, 128], strides = [1, 1]} : vector<16x512xf32> to vector<16x128xf32>
    %cst_7 = arith.constant 5.000000e-01 : f32
    %13 = vector.broadcast %cst_7 : f32 to vector<16x128xf32>
    %14 = arith.mulf %13, %12 : vector<16x128xf32>
    %15 = math.tanh %14 : vector<16x128xf32>
    %cst_8 = arith.constant 5.000000e-01 : f32
    %16 = vector.broadcast %cst_8 : f32 to vector<16x128xf32>
    %17 = arith.mulf %16, %15 : vector<16x128xf32>
    %cst_9 = arith.constant 5.000000e-01 : f32
    %18 = vector.broadcast %cst_9 : f32 to vector<16x128xf32>
    %19 = arith.addf %17, %18 : vector<16x128xf32>
    %20 = vector.extract_strided_slice %11 {offsets = [0, 128], sizes = [16, 128], strides = [1, 1]} : vector<16x512xf32> to vector<16x128xf32>
    %cst_10 = arith.constant 5.000000e-01 : f32
    %21 = vector.broadcast %cst_10 : f32 to vector<16x128xf32>
    %22 = arith.mulf %21, %20 : vector<16x128xf32>
    %23 = math.tanh %22 : vector<16x128xf32>
    %cst_11 = arith.constant 5.000000e-01 : f32
    %24 = vector.broadcast %cst_11 : f32 to vector<16x128xf32>
    %25 = arith.mulf %24, %23 : vector<16x128xf32>
    %cst_12 = arith.constant 5.000000e-01 : f32
    %26 = vector.broadcast %cst_12 : f32 to vector<16x128xf32>
    %27 = arith.addf %25, %26 : vector<16x128xf32>
    %28 = vector.extract_strided_slice %11 {offsets = [0, 256], sizes = [16, 128], strides = [1, 1]} : vector<16x512xf32> to vector<16x128xf32>
    %29 = math.tanh %28 : vector<16x128xf32>
    %30 = vector.extract_strided_slice %11 {offsets = [0, 384], sizes = [16, 128], strides = [1, 1]} : vector<16x512xf32> to vector<16x128xf32>
    %cst_13 = arith.constant 5.000000e-01 : f32
    %31 = vector.broadcast %cst_13 : f32 to vector<16x128xf32>
    %32 = arith.mulf %31, %30 : vector<16x128xf32>
    %33 = math.tanh %32 : vector<16x128xf32>
    %cst_14 = arith.constant 5.000000e-01 : f32
    %34 = vector.broadcast %cst_14 : f32 to vector<16x128xf32>
    %35 = arith.mulf %34, %33 : vector<16x128xf32>
    %cst_15 = arith.constant 5.000000e-01 : f32
    %36 = vector.broadcast %cst_15 : f32 to vector<16x128xf32>
    %37 = arith.addf %35, %36 : vector<16x128xf32>
    %c0_16 = arith.constant 0 : index
    %c0_17 = arith.constant 0 : index
    %38 = vector.load %arg6[%c0_16, %c0_17] : memref<16x128xf32, #tpu.memory_space<vmem>>, vector<16x128xf32>
    %39 = arith.mulf %27, %38 : vector<16x128xf32>
    %40 = arith.mulf %19, %29 : vector<16x128xf32>
    %41 = arith.addf %39, %40 : vector<16x128xf32>
    %42 = math.tanh %41 : vector<16x128xf32>
    %43 = arith.mulf %37, %42 : vector<16x128xf32>
    %c0_18 = arith.constant 0 : index
    %c0_19 = arith.constant 0 : index
    %44 = vector.load %arg5[%c0_18, %c0_19] : memref<16x128xf32, #tpu.memory_space<vmem>>, vector<16x128xf32>
    tpu.vector_store %arg5[%c0_18, %c0_19], %43 {strides = array<i32>} : memref<16x128xf32, #tpu.memory_space<vmem>>, vector<16x128xf32>,
    %c0_20 = arith.constant 0 : index
    %c0_21 = arith.constant 0 : index
    %45 = vector.load %arg6[%c0_20, %c0_21] : memref<16x128xf32, #tpu.memory_space<vmem>>, vector<16x128xf32>
    tpu.vector_store %arg6[%c0_20, %c0_21], %41 {strides = array<i32>} : memref<16x128xf32, #tpu.memory_space<vmem>>, vector<16x128xf32>,
    %46 = arith.index_cast %c0_i32_1 : i32 to index
    %c0_22 = arith.constant 0 : index
    %c0_23 = arith.constant 0 : index
    %47 = vector.load %arg4[%46, %c0_22, %c0_23] : memref<8x16x128xf32, #tpu.memory_space<vmem>>, vector<1x16x128xf32>
    %48 = vector.shape_cast %47 : vector<1x16x128xf32> to vector<16x128xf32>
    %49 = vector.shape_cast %43 : vector<16x128xf32> to vector<1x16x128xf32>
    tpu.vector_store %arg4[%46, %c0_22, %c0_23], %49 {strides = array<i32>} : memref<8x16x128xf32, #tpu.memory_space<vmem>>, vector<1x16x128xf32>,
    %c1_i32 = arith.constant 1 : i32
    %c0_24 = arith.constant 0 : index
    %c0_25 = arith.constant 0 : index
    %50 = vector.load %arg5[%c0_24, %c0_25] : memref<16x128xf32, #tpu.memory_space<vmem>>, vector<16x128xf32>
    %51 = arith.truncf %50 : vector<16x128xf32> to vector<16x128xbf16>
    %52 = arith.index_cast %c1_i32 : i32 to index
    %c0_26 = arith.constant 0 : index
    %c0_27 = arith.constant 0 : index
    %53 = vector.load %arg2[%52, %c0_26, %c0_27] : memref<8x16x512xbf16, #tpu.memory_space<vmem>>, vector<1x16x512xbf16>
    %54 = vector.shape_cast %53 : vector<1x16x512xbf16> to vector<16x512xbf16>
    %55 = arith.extf %54 : vector<16x512xbf16> to vector<16x512xf32>
    %c0_28 = arith.constant 0 : index
    %c0_29 = arith.constant 0 : index
    %56 = vector.load %arg3[%c0_28, %c0_29] : memref<128x512xbf16, #tpu.memory_space<vmem>>, vector<128x512xbf16>
    %cst_30 = arith.constant dense<0.000000e+00> : vector<16x512xf32>
    %57 = tpu.matmul %51, %56, %cst_30 {dimension_numbers = #tpu.dot_dimension_numbers<[1], [0], [0], [1], [0, 0, 1, 1], [], []>} : vector<16x128xbf16>, vector<128x512xbf16>, vector<16x512xf32> -> vector<16x512xf32>
    %58 = arith.addf %55, %57 : vector<16x512xf32>
    %59 = vector.extract_strided_slice %58 {offsets = [0, 0], sizes = [16, 128], strides = [1, 1]} : vector<16x512xf32> to vector<16x128xf32>
    %cst_31 = arith.constant 5.000000e-01 : f32
    %60 = vector.broadcast %cst_31 : f32 to vector<16x128xf32>
    %61 = arith.mulf %60, %59 : vector<16x128xf32>
    %62 = math.tanh %61 : vector<16x128xf32>
    %cst_32 = arith.constant 5.000000e-01 : f32
    %63 = vector.broadcast %cst_32 : f32 to vector<16x128xf32>
    %64 = arith.mulf %63, %62 : vector<16x128xf32>
    %cst_33 = arith.constant 5.000000e-01 : f32
    %65 = vector.broadcast %cst_33 : f32 to vector<16x128xf32>
    %66 = arith.addf %64, %65 : vector<16x128xf32>
    %67 = vector.extract_strided_slice %58 {offsets = [0, 128], sizes = [16, 128], strides = [1, 1]} : vector<16x512xf32> to vector<16x128xf32>
    %cst_34 = arith.constant 5.000000e-01 : f32
    %68 = vector.broadcast %cst_34 : f32 to vector<16x128xf32>
    %69 = arith.mulf %68, %67 : vector<16x128xf32>
    %70 = math.tanh %69 : vector<16x128xf32>
    %cst_35 = arith.constant 5.000000e-01 : f32
    %71 = vector.broadcast %cst_35 : f32 to vector<16x128xf32>
    %72 = arith.mulf %71, %70 : vector<16x128xf32>
    %cst_36 = arith.constant 5.000000e-01 : f32
    %73 = vector.broadcast %cst_36 : f32 to vector<16x128xf32>
    %74 = arith.addf %72, %73 : vector<16x128xf32>
    %75 = vector.extract_strided_slice %58 {offsets = [0, 256], sizes = [16, 128], strides = [1, 1]} : vector<16x512xf32> to vector<16x128xf32>
    %76 = math.tanh %75 : vector<16x128xf32>
    %77 = vector.extract_strided_slice %58 {offsets = [0, 384], sizes = [16, 128], strides = [1, 1]} : vector<16x512xf32> to vector<16x128xf32>
    %cst_37 = arith.constant 5.000000e-01 : f32
    %78 = vector.broadcast %cst_37 : f32 to vector<16x128xf32>
    %79 = arith.mulf %78, %77 : vector<16x128xf32>
    %80 = math.tanh %79 : vector<16x128xf32>
    %cst_38 = arith.constant 5.000000e-01 : f32
    %81 = vector.broadcast %cst_38 : f32 to vector<16x128xf32>
    %82 = arith.mulf %81, %80 : vector<16x128xf32>
    %cst_39 = arith.constant 5.000000e-01 : f32
    %83 = vector.broadcast %cst_39 : f32 to vector<16x128xf32>
    %84 = arith.addf %82, %83 : vector<16x128xf32>
    %c0_40 = arith.constant 0 : index
    %c0_41 = arith.constant 0 : index
    %85 = vector.load %arg6[%c0_40, %c0_41] : memref<16x128xf32, #tpu.memory_space<vmem>>, vector<16x128xf32>
    %86 = arith.mulf %74, %85 : vector<16x128xf32>
    %87 = arith.mulf %66, %76 : vector<16x128xf32>
    %88 = arith.addf %86, %87 : vector<16x128xf32>
    %89 = math.tanh %88 : vector<16x128xf32>
    %90 = arith.mulf %84, %89 : vector<16x128xf32>
    %c0_42 = arith.constant 0 : index
    %c0_43 = arith.constant 0 : index
    %91 = vector.load %arg5[%c0_42, %c0_43] : memref<16x128xf32, #tpu.memory_space<vmem>>, vector<16x128xf32>
    tpu.vector_store %arg5[%c0_42, %c0_43], %90 {strides = array<i32>} : memref<16x128xf32, #tpu.memory_space<vmem>>, vector<16x128xf32>,
    %c0_44 = arith.constant 0 : index
    %c0_45 = arith.constant 0 : index
    %92 = vector.load %arg6[%c0_44, %c0_45] : memref<16x128xf32, #tpu.memory_space<vmem>>, vector<16x128xf32>
    tpu.vector_store %arg6[%c0_44, %c0_45], %88 {strides = array<i32>} : memref<16x128xf32, #tpu.memory_space<vmem>>, vector<16x128xf32>,
    %93 = arith.index_cast %c1_i32 : i32 to index
    %c0_46 = arith.constant 0 : index
    %c0_47 = arith.constant 0 : index
    %94 = vector.load %arg4[%93, %c0_46, %c0_47] : memref<8x16x128xf32, #tpu.memory_space<vmem>>, vector<1x16x128xf32>
    %95 = vector.shape_cast %94 : vector<1x16x128xf32> to vector<16x128xf32>
    %96 = vector.shape_cast %90 : vector<16x128xf32> to vector<1x16x128xf32>
    tpu.vector_store %arg4[%93, %c0_46, %c0_47], %96 {strides = array<i32>} : memref<8x16x128xf32, #tpu.memory_space<vmem>>, vector<1x16x128xf32>,
    %c2_i32 = arith.constant 2 : i32
    %c0_48 = arith.constant 0 : index
    %c0_49 = arith.constant 0 : index
    %97 = vector.load %arg5[%c0_48, %c0_49] : memref<16x128xf32, #tpu.memory_space<vmem>>, vector<16x128xf32>
    %98 = arith.truncf %97 : vector<16x128xf32> to vector<16x128xbf16>
    %99 = arith.index_cast %c2_i32 : i32 to index
    %c0_50 = arith.constant 0 : index
    %c0_51 = arith.constant 0 : index
    %100 = vector.load %arg2[%99, %c0_50, %c0_51] : memref<8x16x512xbf16, #tpu.memory_space<vmem>>, vector<1x16x512xbf16>
    %101 = vector.shape_cast %100 : vector<1x16x512xbf16> to vector<16x512xbf16>
    %102 = arith.extf %101 : vector<16x512xbf16> to vector<16x512xf32>
    %c0_52 = arith.constant 0 : index
    %c0_53 = arith.constant 0 : index
    %103 = vector.load %arg3[%c0_52, %c0_53] : memref<128x512xbf16, #tpu.memory_space<vmem>>, vector<128x512xbf16>
    %cst_54 = arith.constant dense<0.000000e+00> : vector<16x512xf32>
    %104 = tpu.matmul %98, %103, %cst_54 {dimension_numbers = #tpu.dot_dimension_numbers<[1], [0], [0], [1], [0, 0, 1, 1], [], []>} : vector<16x128xbf16>, vector<128x512xbf16>, vector<16x512xf32> -> vector<16x512xf32>
    %105 = arith.addf %102, %104 : vector<16x512xf32>
    %106 = vector.extract_strided_slice %105 {offsets = [0, 0], sizes = [16, 128], strides = [1, 1]} : vector<16x512xf32> to vector<16x128xf32>
    %cst_55 = arith.constant 5.000000e-01 : f32
    %107 = vector.broadcast %cst_55 : f32 to vector<16x128xf32>
    %108 = arith.mulf %107, %106 : vector<16x128xf32>
    %109 = math.tanh %108 : vector<16x128xf32>
    %cst_56 = arith.constant 5.000000e-01 : f32
    %110 = vector.broadcast %cst_56 : f32 to vector<16x128xf32>
    %111 = arith.mulf %110, %109 : vector<16x128xf32>
    %cst_57 = arith.constant 5.000000e-01 : f32
    %112 = vector.broadcast %cst_57 : f32 to vector<16x128xf32>
    %113 = arith.addf %111, %112 : vector<16x128xf32>
    %114 = vector.extract_strided_slice %105 {offsets = [0, 128], sizes = [16, 128], strides = [1, 1]} : vector<16x512xf32> to vector<16x128xf32>
    %cst_58 = arith.constant 5.000000e-01 : f32
    %115 = vector.broadcast %cst_58 : f32 to vector<16x128xf32>
    %116 = arith.mulf %115, %114 : vector<16x128xf32>
    %117 = math.tanh %116 : vector<16x128xf32>
    %cst_59 = arith.constant 5.000000e-01 : f32
    %118 = vector.broadcast %cst_59 : f32 to vector<16x128xf32>
    %119 = arith.mulf %118, %117 : vector<16x128xf32>
    %cst_60 = arith.constant 5.000000e-01 : f32
    %120 = vector.broadcast %cst_60 : f32 to vector<16x128xf32>
    %121 = arith.addf %119, %120 : vector<16x128xf32>
    %122 = vector.extract_strided_slice %105 {offsets = [0, 256], sizes = [16, 128], strides = [1, 1]} : vector<16x512xf32> to vector<16x128xf32>
    %123 = math.tanh %122 : vector<16x128xf32>
    %124 = vector.extract_strided_slice %105 {offsets = [0, 384], sizes = [16, 128], strides = [1, 1]} : vector<16x512xf32> to vector<16x128xf32>
    %cst_61 = arith.constant 5.000000e-01 : f32
    %125 = vector.broadcast %cst_61 : f32 to vector<16x128xf32>
    %126 = arith.mulf %125, %124 : vector<16x128xf32>
    %127 = math.tanh %126 : vector<16x128xf32>
    %cst_62 = arith.constant 5.000000e-01 : f32
    %128 = vector.broadcast %cst_62 : f32 to vector<16x128xf32>
    %129 = arith.mulf %128, %127 : vector<16x128xf32>
    %cst_63 = arith.constant 5.000000e-01 : f32
    %130 = vector.broadcast %cst_63 : f32 to vector<16x128xf32>
    %131 = arith.addf %129, %130 : vector<16x128xf32>
    %c0_64 = arith.constant 0 : index
    %c0_65 = arith.constant 0 : index
    %132 = vector.load %arg6[%c0_64, %c0_65] : memref<16x128xf32, #tpu.memory_space<vmem>>, vector<16x128xf32>
    %133 = arith.mulf %121, %132 : vector<16x128xf32>
    %134 = arith.mulf %113, %123 : vector<16x128xf32>
    %135 = arith.addf %133, %134 : vector<16x128xf32>
    %136 = math.tanh %135 : vector<16x128xf32>
    %137 = arith.mulf %131, %136 : vector<16x128xf32>
    %c0_66 = arith.constant 0 : index
    %c0_67 = arith.constant 0 : index
    %138 = vector.load %arg5[%c0_66, %c0_67] : memref<16x128xf32, #tpu.memory_space<vmem>>, vector<16x128xf32>
    tpu.vector_store %arg5[%c0_66, %c0_67], %137 {strides = array<i32>} : memref<16x128xf32, #tpu.memory_space<vmem>>, vector<16x128xf32>,
    %c0_68 = arith.constant 0 : index
    %c0_69 = arith.constant 0 : index
    %139 = vector.load %arg6[%c0_68, %c0_69] : memref<16x128xf32, #tpu.memory_space<vmem>>, vector<16x128xf32>
    tpu.vector_store %arg6[%c0_68, %c0_69], %135 {strides = array<i32>} : memref<16x128xf32, #tpu.memory_space<vmem>>, vector<16x128xf32>,
    %140 = arith.index_cast %c2_i32 : i32 to index
    %c0_70 = arith.constant 0 : index
    %c0_71 = arith.constant 0 : index
    %141 = vector.load %arg4[%140, %c0_70, %c0_71] : memref<8x16x128xf32, #tpu.memory_space<vmem>>, vector<1x16x128xf32>
    %142 = vector.shape_cast %141 : vector<1x16x128xf32> to vector<16x128xf32>
    %143 = vector.shape_cast %137 : vector<16x128xf32> to vector<1x16x128xf32>
    tpu.vector_store %arg4[%140, %c0_70, %c0_71], %143 {strides = array<i32>} : memref<8x16x128xf32, #tpu.memory_space<vmem>>, vector<1x16x128xf32>,
    %c3_i32 = arith.constant 3 : i32
    %c0_72 = arith.constant 0 : index
    %c0_73 = arith.constant 0 : index
    %144 = vector.load %arg5[%c0_72, %c0_73] : memref<16x128xf32, #tpu.memory_space<vmem>>, vector<16x128xf32>
    %145 = arith.truncf %144 : vector<16x128xf32> to vector<16x128xbf16>
    %146 = arith.index_cast %c3_i32 : i32 to index
    %c0_74 = arith.constant 0 : index
    %c0_75 = arith.constant 0 : index
    %147 = vector.load %arg2[%146, %c0_74, %c0_75] : memref<8x16x512xbf16, #tpu.memory_space<vmem>>, vector<1x16x512xbf16>
    %148 = vector.shape_cast %147 : vector<1x16x512xbf16> to vector<16x512xbf16>
    %149 = arith.extf %148 : vector<16x512xbf16> to vector<16x512xf32>
    %c0_76 = arith.constant 0 : index
    %c0_77 = arith.constant 0 : index
    %150 = vector.load %arg3[%c0_76, %c0_77] : memref<128x512xbf16, #tpu.memory_space<vmem>>, vector<128x512xbf16>
    %cst_78 = arith.constant dense<0.000000e+00> : vector<16x512xf32>
    %151 = tpu.matmul %145, %150, %cst_78 {dimension_numbers = #tpu.dot_dimension_numbers<[1], [0], [0], [1], [0, 0, 1, 1], [], []>} : vector<16x128xbf16>, vector<128x512xbf16>, vector<16x512xf32> -> vector<16x512xf32>
    %152 = arith.addf %149, %151 : vector<16x512xf32>
    %153 = vector.extract_strided_slice %152 {offsets = [0, 0], sizes = [16, 128], strides = [1, 1]} : vector<16x512xf32> to vector<16x128xf32>
    %cst_79 = arith.constant 5.000000e-01 : f32
    %154 = vector.broadcast %cst_79 : f32 to vector<16x128xf32>
    %155 = arith.mulf %154, %153 : vector<16x128xf32>
    %156 = math.tanh %155 : vector<16x128xf32>
    %cst_80 = arith.constant 5.000000e-01 : f32
    %157 = vector.broadcast %cst_80 : f32 to vector<16x128xf32>
    %158 = arith.mulf %157, %156 : vector<16x128xf32>
    %cst_81 = arith.constant 5.000000e-01 : f32
    %159 = vector.broadcast %cst_81 : f32 to vector<16x128xf32>
    %160 = arith.addf %158, %159 : vector<16x128xf32>
    %161 = vector.extract_strided_slice %152 {offsets = [0, 128], sizes = [16, 128], strides = [1, 1]} : vector<16x512xf32> to vector<16x128xf32>
    %cst_82 = arith.constant 5.000000e-01 : f32
    %162 = vector.broadcast %cst_82 : f32 to vector<16x128xf32>
    %163 = arith.mulf %162, %161 : vector<16x128xf32>
    %164 = math.tanh %163 : vector<16x128xf32>
    %cst_83 = arith.constant 5.000000e-01 : f32
    %165 = vector.broadcast %cst_83 : f32 to vector<16x128xf32>
    %166 = arith.mulf %165, %164 : vector<16x128xf32>
    %cst_84 = arith.constant 5.000000e-01 : f32
    %167 = vector.broadcast %cst_84 : f32 to vector<16x128xf32>
    %168 = arith.addf %166, %167 : vector<16x128xf32>
    %169 = vector.extract_strided_slice %152 {offsets = [0, 256], sizes = [16, 128], strides = [1, 1]} : vector<16x512xf32> to vector<16x128xf32>
    %170 = math.tanh %169 : vector<16x128xf32>
    %171 = vector.extract_strided_slice %152 {offsets = [0, 384], sizes = [16, 128], strides = [1, 1]} : vector<16x512xf32> to vector<16x128xf32>
    %cst_85 = arith.constant 5.000000e-01 : f32
    %172 = vector.broadcast %cst_85 : f32 to vector<16x128xf32>
    %173 = arith.mulf %172, %171 : vector<16x128xf32>
    %174 = math.tanh %173 : vector<16x128xf32>
    %cst_86 = arith.constant 5.000000e-01 : f32
    %175 = vector.broadcast %cst_86 : f32 to vector<16x128xf32>
    %176 = arith.mulf %175, %174 : vector<16x128xf32>
    %cst_87 = arith.constant 5.000000e-01 : f32
    %177 = vector.broadcast %cst_87 : f32 to vector<16x128xf32>
    %178 = arith.addf %176, %177 : vector<16x128xf32>
    %c0_88 = arith.constant 0 : index
    %c0_89 = arith.constant 0 : index
    %179 = vector.load %arg6[%c0_88, %c0_89] : memref<16x128xf32, #tpu.memory_space<vmem>>, vector<16x128xf32>
    %180 = arith.mulf %168, %179 : vector<16x128xf32>
    %181 = arith.mulf %160, %170 : vector<16x128xf32>
    %182 = arith.addf %180, %181 : vector<16x128xf32>
    %183 = math.tanh %182 : vector<16x128xf32>
    %184 = arith.mulf %178, %183 : vector<16x128xf32>
    %c0_90 = arith.constant 0 : index
    %c0_91 = arith.constant 0 : index
    %185 = vector.load %arg5[%c0_90, %c0_91] : memref<16x128xf32, #tpu.memory_space<vmem>>, vector<16x128xf32>
    tpu.vector_store %arg5[%c0_90, %c0_91], %184 {strides = array<i32>} : memref<16x128xf32, #tpu.memory_space<vmem>>, vector<16x128xf32>,
    %c0_92 = arith.constant 0 : index
    %c0_93 = arith.constant 0 : index
    %186 = vector.load %arg6[%c0_92, %c0_93] : memref<16x128xf32, #tpu.memory_space<vmem>>, vector<16x128xf32>
    tpu.vector_store %arg6[%c0_92, %c0_93], %182 {strides = array<i32>} : memref<16x128xf32, #tpu.memory_space<vmem>>, vector<16x128xf32>,
    %187 = arith.index_cast %c3_i32 : i32 to index
    %c0_94 = arith.constant 0 : index
    %c0_95 = arith.constant 0 : index
    %188 = vector.load %arg4[%187, %c0_94, %c0_95] : memref<8x16x128xf32, #tpu.memory_space<vmem>>, vector<1x16x128xf32>
    %189 = vector.shape_cast %188 : vector<1x16x128xf32> to vector<16x128xf32>
    %190 = vector.shape_cast %184 : vector<16x128xf32> to vector<1x16x128xf32>
    tpu.vector_store %arg4[%187, %c0_94, %c0_95], %190 {strides = array<i32>} : memref<8x16x128xf32, #tpu.memory_space<vmem>>, vector<1x16x128xf32>,
    %c4_i32 = arith.constant 4 : i32
    %c0_96 = arith.constant 0 : index
    %c0_97 = arith.constant 0 : index
    %191 = vector.load %arg5[%c0_96, %c0_97] : memref<16x128xf32, #tpu.memory_space<vmem>>, vector<16x128xf32>
    %192 = arith.truncf %191 : vector<16x128xf32> to vector<16x128xbf16>
    %193 = arith.index_cast %c4_i32 : i32 to index
    %c0_98 = arith.constant 0 : index
    %c0_99 = arith.constant 0 : index
    %194 = vector.load %arg2[%193, %c0_98, %c0_99] : memref<8x16x512xbf16, #tpu.memory_space<vmem>>, vector<1x16x512xbf16>
    %195 = vector.shape_cast %194 : vector<1x16x512xbf16> to vector<16x512xbf16>
    %196 = arith.extf %195 : vector<16x512xbf16> to vector<16x512xf32>
    %c0_100 = arith.constant 0 : index
    %c0_101 = arith.constant 0 : index
    %197 = vector.load %arg3[%c0_100, %c0_101] : memref<128x512xbf16, #tpu.memory_space<vmem>>, vector<128x512xbf16>
    %cst_102 = arith.constant dense<0.000000e+00> : vector<16x512xf32>
    %198 = tpu.matmul %192, %197, %cst_102 {dimension_numbers = #tpu.dot_dimension_numbers<[1], [0], [0], [1], [0, 0, 1, 1], [], []>} : vector<16x128xbf16>, vector<128x512xbf16>, vector<16x512xf32> -> vector<16x512xf32>
    %199 = arith.addf %196, %198 : vector<16x512xf32>
    %200 = vector.extract_strided_slice %199 {offsets = [0, 0], sizes = [16, 128], strides = [1, 1]} : vector<16x512xf32> to vector<16x128xf32>
    %cst_103 = arith.constant 5.000000e-01 : f32
    %201 = vector.broadcast %cst_103 : f32 to vector<16x128xf32>
    %202 = arith.mulf %201, %200 : vector<16x128xf32>
    %203 = math.tanh %202 : vector<16x128xf32>
    %cst_104 = arith.constant 5.000000e-01 : f32
    %204 = vector.broadcast %cst_104 : f32 to vector<16x128xf32>
    %205 = arith.mulf %204, %203 : vector<16x128xf32>
    %cst_105 = arith.constant 5.000000e-01 : f32
    %206 = vector.broadcast %cst_105 : f32 to vector<16x128xf32>
    %207 = arith.addf %205, %206 : vector<16x128xf32>
    %208 = vector.extract_strided_slice %199 {offsets = [0, 128], sizes = [16, 128], strides = [1, 1]} : vector<16x512xf32> to vector<16x128xf32>
    %cst_106 = arith.constant 5.000000e-01 : f32
    %209 = vector.broadcast %cst_106 : f32 to vector<16x128xf32>
    %210 = arith.mulf %209, %208 : vector<16x128xf32>
    %211 = math.tanh %210 : vector<16x128xf32>
    %cst_107 = arith.constant 5.000000e-01 : f32
    %212 = vector.broadcast %cst_107 : f32 to vector<16x128xf32>
    %213 = arith.mulf %212, %211 : vector<16x128xf32>
    %cst_108 = arith.constant 5.000000e-01 : f32
    %214 = vector.broadcast %cst_108 : f32 to vector<16x128xf32>
    %215 = arith.addf %213, %214 : vector<16x128xf32>
    %216 = vector.extract_strided_slice %199 {offsets = [0, 256], sizes = [16, 128], strides = [1, 1]} : vector<16x512xf32> to vector<16x128xf32>
    %217 = math.tanh %216 : vector<16x128xf32>
    %218 = vector.extract_strided_slice %199 {offsets = [0, 384], sizes = [16, 128], strides = [1, 1]} : vector<16x512xf32> to vector<16x128xf32>
    %cst_109 = arith.constant 5.000000e-01 : f32
    %219 = vector.broadcast %cst_109 : f32 to vector<16x128xf32>
    %220 = arith.mulf %219, %218 : vector<16x128xf32>
    %221 = math.tanh %220 : vector<16x128xf32>
    %cst_110 = arith.constant 5.000000e-01 : f32
    %222 = vector.broadcast %cst_110 : f32 to vector<16x128xf32>
    %223 = arith.mulf %222, %221 : vector<16x128xf32>
    %cst_111 = arith.constant 5.000000e-01 : f32
    %224 = vector.broadcast %cst_111 : f32 to vector<16x128xf32>
    %225 = arith.addf %223, %224 : vector<16x128xf32>
    %c0_112 = arith.constant 0 : index
    %c0_113 = arith.constant 0 : index
    %226 = vector.load %arg6[%c0_112, %c0_113] : memref<16x128xf32, #tpu.memory_space<vmem>>, vector<16x128xf32>
    %227 = arith.mulf %215, %226 : vector<16x128xf32>
    %228 = arith.mulf %207, %217 : vector<16x128xf32>
    %229 = arith.addf %227, %228 : vector<16x128xf32>
    %230 = math.tanh %229 : vector<16x128xf32>
    %231 = arith.mulf %225, %230 : vector<16x128xf32>
    %c0_114 = arith.constant 0 : index
    %c0_115 = arith.constant 0 : index
    %232 = vector.load %arg5[%c0_114, %c0_115] : memref<16x128xf32, #tpu.memory_space<vmem>>, vector<16x128xf32>
    tpu.vector_store %arg5[%c0_114, %c0_115], %231 {strides = array<i32>} : memref<16x128xf32, #tpu.memory_space<vmem>>, vector<16x128xf32>,
    %c0_116 = arith.constant 0 : index
    %c0_117 = arith.constant 0 : index
    %233 = vector.load %arg6[%c0_116, %c0_117] : memref<16x128xf32, #tpu.memory_space<vmem>>, vector<16x128xf32>
    tpu.vector_store %arg6[%c0_116, %c0_117], %229 {strides = array<i32>} : memref<16x128xf32, #tpu.memory_space<vmem>>, vector<16x128xf32>,
    %234 = arith.index_cast %c4_i32 : i32 to index
    %c0_118 = arith.constant 0 : index
    %c0_119 = arith.constant 0 : index
    %235 = vector.load %arg4[%234, %c0_118, %c0_119] : memref<8x16x128xf32, #tpu.memory_space<vmem>>, vector<1x16x128xf32>
    %236 = vector.shape_cast %235 : vector<1x16x128xf32> to vector<16x128xf32>
    %237 = vector.shape_cast %231 : vector<16x128xf32> to vector<1x16x128xf32>
    tpu.vector_store %arg4[%234, %c0_118, %c0_119], %237 {strides = array<i32>} : memref<8x16x128xf32, #tpu.memory_space<vmem>>, vector<1x16x128xf32>,
    %c5_i32 = arith.constant 5 : i32
    %c0_120 = arith.constant 0 : index
    %c0_121 = arith.constant 0 : index
    %238 = vector.load %arg5[%c0_120, %c0_121] : memref<16x128xf32, #tpu.memory_space<vmem>>, vector<16x128xf32>
    %239 = arith.truncf %238 : vector<16x128xf32> to vector<16x128xbf16>
    %240 = arith.index_cast %c5_i32 : i32 to index
    %c0_122 = arith.constant 0 : index
    %c0_123 = arith.constant 0 : index
    %241 = vector.load %arg2[%240, %c0_122, %c0_123] : memref<8x16x512xbf16, #tpu.memory_space<vmem>>, vector<1x16x512xbf16>
    %242 = vector.shape_cast %241 : vector<1x16x512xbf16> to vector<16x512xbf16>
    %243 = arith.extf %242 : vector<16x512xbf16> to vector<16x512xf32>
    %c0_124 = arith.constant 0 : index
    %c0_125 = arith.constant 0 : index
    %244 = vector.load %arg3[%c0_124, %c0_125] : memref<128x512xbf16, #tpu.memory_space<vmem>>, vector<128x512xbf16>
    %cst_126 = arith.constant dense<0.000000e+00> : vector<16x512xf32>
    %245 = tpu.matmul %239, %244, %cst_126 {dimension_numbers = #tpu.dot_dimension_numbers<[1], [0], [0], [1], [0, 0, 1, 1], [], []>} : vector<16x128xbf16>, vector<128x512xbf16>, vector<16x512xf32> -> vector<16x512xf32>
    %246 = arith.addf %243, %245 : vector<16x512xf32>
    %247 = vector.extract_strided_slice %246 {offsets = [0, 0], sizes = [16, 128], strides = [1, 1]} : vector<16x512xf32> to vector<16x128xf32>
    %cst_127 = arith.constant 5.000000e-01 : f32
    %248 = vector.broadcast %cst_127 : f32 to vector<16x128xf32>
    %249 = arith.mulf %248, %247 : vector<16x128xf32>
    %250 = math.tanh %249 : vector<16x128xf32>
    %cst_128 = arith.constant 5.000000e-01 : f32
    %251 = vector.broadcast %cst_128 : f32 to vector<16x128xf32>
    %252 = arith.mulf %251, %250 : vector<16x128xf32>
    %cst_129 = arith.constant 5.000000e-01 : f32
    %253 = vector.broadcast %cst_129 : f32 to vector<16x128xf32>
    %254 = arith.addf %252, %253 : vector<16x128xf32>
    %255 = vector.extract_strided_slice %246 {offsets = [0, 128], sizes = [16, 128], strides = [1, 1]} : vector<16x512xf32> to vector<16x128xf32>
    %cst_130 = arith.constant 5.000000e-01 : f32
    %256 = vector.broadcast %cst_130 : f32 to vector<16x128xf32>
    %257 = arith.mulf %256, %255 : vector<16x128xf32>
    %258 = math.tanh %257 : vector<16x128xf32>
    %cst_131 = arith.constant 5.000000e-01 : f32
    %259 = vector.broadcast %cst_131 : f32 to vector<16x128xf32>
    %260 = arith.mulf %259, %258 : vector<16x128xf32>
    %cst_132 = arith.constant 5.000000e-01 : f32
    %261 = vector.broadcast %cst_132 : f32 to vector<16x128xf32>
    %262 = arith.addf %260, %261 : vector<16x128xf32>
    %263 = vector.extract_strided_slice %246 {offsets = [0, 256], sizes = [16, 128], strides = [1, 1]} : vector<16x512xf32> to vector<16x128xf32>
    %264 = math.tanh %263 : vector<16x128xf32>
    %265 = vector.extract_strided_slice %246 {offsets = [0, 384], sizes = [16, 128], strides = [1, 1]} : vector<16x512xf32> to vector<16x128xf32>
    %cst_133 = arith.constant 5.000000e-01 : f32
    %266 = vector.broadcast %cst_133 : f32 to vector<16x128xf32>
    %267 = arith.mulf %266, %265 : vector<16x128xf32>
    %268 = math.tanh %267 : vector<16x128xf32>
    %cst_134 = arith.constant 5.000000e-01 : f32
    %269 = vector.broadcast %cst_134 : f32 to vector<16x128xf32>
    %270 = arith.mulf %269, %268 : vector<16x128xf32>
    %cst_135 = arith.constant 5.000000e-01 : f32
    %271 = vector.broadcast %cst_135 : f32 to vector<16x128xf32>
    %272 = arith.addf %270, %271 : vector<16x128xf32>
    %c0_136 = arith.constant 0 : index
    %c0_137 = arith.constant 0 : index
    %273 = vector.load %arg6[%c0_136, %c0_137] : memref<16x128xf32, #tpu.memory_space<vmem>>, vector<16x128xf32>
    %274 = arith.mulf %262, %273 : vector<16x128xf32>
    %275 = arith.mulf %254, %264 : vector<16x128xf32>
    %276 = arith.addf %274, %275 : vector<16x128xf32>
    %277 = math.tanh %276 : vector<16x128xf32>
    %278 = arith.mulf %272, %277 : vector<16x128xf32>
    %c0_138 = arith.constant 0 : index
    %c0_139 = arith.constant 0 : index
    %279 = vector.load %arg5[%c0_138, %c0_139] : memref<16x128xf32, #tpu.memory_space<vmem>>, vector<16x128xf32>
    tpu.vector_store %arg5[%c0_138, %c0_139], %278 {strides = array<i32>} : memref<16x128xf32, #tpu.memory_space<vmem>>, vector<16x128xf32>,
    %c0_140 = arith.constant 0 : index
    %c0_141 = arith.constant 0 : index
    %280 = vector.load %arg6[%c0_140, %c0_141] : memref<16x128xf32, #tpu.memory_space<vmem>>, vector<16x128xf32>
    tpu.vector_store %arg6[%c0_140, %c0_141], %276 {strides = array<i32>} : memref<16x128xf32, #tpu.memory_space<vmem>>, vector<16x128xf32>,
    %281 = arith.index_cast %c5_i32 : i32 to index
    %c0_142 = arith.constant 0 : index
    %c0_143 = arith.constant 0 : index
    %282 = vector.load %arg4[%281, %c0_142, %c0_143] : memref<8x16x128xf32, #tpu.memory_space<vmem>>, vector<1x16x128xf32>
    %283 = vector.shape_cast %282 : vector<1x16x128xf32> to vector<16x128xf32>
    %284 = vector.shape_cast %278 : vector<16x128xf32> to vector<1x16x128xf32>
    tpu.vector_store %arg4[%281, %c0_142, %c0_143], %284 {strides = array<i32>} : memref<8x16x128xf32, #tpu.memory_space<vmem>>, vector<1x16x128xf32>,
    %c6_i32 = arith.constant 6 : i32
    %c0_144 = arith.constant 0 : index
    %c0_145 = arith.constant 0 : index
    %285 = vector.load %arg5[%c0_144, %c0_145] : memref<16x128xf32, #tpu.memory_space<vmem>>, vector<16x128xf32>
    %286 = arith.truncf %285 : vector<16x128xf32> to vector<16x128xbf16>
    %287 = arith.index_cast %c6_i32 : i32 to index
    %c0_146 = arith.constant 0 : index
    %c0_147 = arith.constant 0 : index
    %288 = vector.load %arg2[%287, %c0_146, %c0_147] : memref<8x16x512xbf16, #tpu.memory_space<vmem>>, vector<1x16x512xbf16>
    %289 = vector.shape_cast %288 : vector<1x16x512xbf16> to vector<16x512xbf16>
    %290 = arith.extf %289 : vector<16x512xbf16> to vector<16x512xf32>
    %c0_148 = arith.constant 0 : index
    %c0_149 = arith.constant 0 : index
    %291 = vector.load %arg3[%c0_148, %c0_149] : memref<128x512xbf16, #tpu.memory_space<vmem>>, vector<128x512xbf16>
    %cst_150 = arith.constant dense<0.000000e+00> : vector<16x512xf32>
    %292 = tpu.matmul %286, %291, %cst_150 {dimension_numbers = #tpu.dot_dimension_numbers<[1], [0], [0], [1], [0, 0, 1, 1], [], []>} : vector<16x128xbf16>, vector<128x512xbf16>, vector<16x512xf32> -> vector<16x512xf32>
    %293 = arith.addf %290, %292 : vector<16x512xf32>
    %294 = vector.extract_strided_slice %293 {offsets = [0, 0], sizes = [16, 128], strides = [1, 1]} : vector<16x512xf32> to vector<16x128xf32>
    %cst_151 = arith.constant 5.000000e-01 : f32
    %295 = vector.broadcast %cst_151 : f32 to vector<16x128xf32>
    %296 = arith.mulf %295, %294 : vector<16x128xf32>
    %297 = math.tanh %296 : vector<16x128xf32>
    %cst_152 = arith.constant 5.000000e-01 : f32
    %298 = vector.broadcast %cst_152 : f32 to vector<16x128xf32>
    %299 = arith.mulf %298, %297 : vector<16x128xf32>
    %cst_153 = arith.constant 5.000000e-01 : f32
    %300 = vector.broadcast %cst_153 : f32 to vector<16x128xf32>
    %301 = arith.addf %299, %300 : vector<16x128xf32>
    %302 = vector.extract_strided_slice %293 {offsets = [0, 128], sizes = [16, 128], strides = [1, 1]} : vector<16x512xf32> to vector<16x128xf32>
    %cst_154 = arith.constant 5.000000e-01 : f32
    %303 = vector.broadcast %cst_154 : f32 to vector<16x128xf32>
    %304 = arith.mulf %303, %302 : vector<16x128xf32>
    %305 = math.tanh %304 : vector<16x128xf32>
    %cst_155 = arith.constant 5.000000e-01 : f32
    %306 = vector.broadcast %cst_155 : f32 to vector<16x128xf32>
    %307 = arith.mulf %306, %305 : vector<16x128xf32>
    %cst_156 = arith.constant 5.000000e-01 : f32
    %308 = vector.broadcast %cst_156 : f32 to vector<16x128xf32>
    %309 = arith.addf %307, %308 : vector<16x128xf32>
    %310 = vector.extract_strided_slice %293 {offsets = [0, 256], sizes = [16, 128], strides = [1, 1]} : vector<16x512xf32> to vector<16x128xf32>
    %311 = math.tanh %310 : vector<16x128xf32>
    %312 = vector.extract_strided_slice %293 {offsets = [0, 384], sizes = [16, 128], strides = [1, 1]} : vector<16x512xf32> to vector<16x128xf32>
    %cst_157 = arith.constant 5.000000e-01 : f32
    %313 = vector.broadcast %cst_157 : f32 to vector<16x128xf32>
    %314 = arith.mulf %313, %312 : vector<16x128xf32>
    %315 = math.tanh %314 : vector<16x128xf32>
    %cst_158 = arith.constant 5.000000e-01 : f32
    %316 = vector.broadcast %cst_158 : f32 to vector<16x128xf32>
    %317 = arith.mulf %316, %315 : vector<16x128xf32>
    %cst_159 = arith.constant 5.000000e-01 : f32
    %318 = vector.broadcast %cst_159 : f32 to vector<16x128xf32>
    %319 = arith.addf %317, %318 : vector<16x128xf32>
    %c0_160 = arith.constant 0 : index
    %c0_161 = arith.constant 0 : index
    %320 = vector.load %arg6[%c0_160, %c0_161] : memref<16x128xf32, #tpu.memory_space<vmem>>, vector<16x128xf32>
    %321 = arith.mulf %309, %320 : vector<16x128xf32>
    %322 = arith.mulf %301, %311 : vector<16x128xf32>
    %323 = arith.addf %321, %322 : vector<16x128xf32>
    %324 = math.tanh %323 : vector<16x128xf32>
    %325 = arith.mulf %319, %324 : vector<16x128xf32>
    %c0_162 = arith.constant 0 : index
    %c0_163 = arith.constant 0 : index
    %326 = vector.load %arg5[%c0_162, %c0_163] : memref<16x128xf32, #tpu.memory_space<vmem>>, vector<16x128xf32>
    tpu.vector_store %arg5[%c0_162, %c0_163], %325 {strides = array<i32>} : memref<16x128xf32, #tpu.memory_space<vmem>>, vector<16x128xf32>,
    %c0_164 = arith.constant 0 : index
    %c0_165 = arith.constant 0 : index
    %327 = vector.load %arg6[%c0_164, %c0_165] : memref<16x128xf32, #tpu.memory_space<vmem>>, vector<16x128xf32>
    tpu.vector_store %arg6[%c0_164, %c0_165], %323 {strides = array<i32>} : memref<16x128xf32, #tpu.memory_space<vmem>>, vector<16x128xf32>,
    %328 = arith.index_cast %c6_i32 : i32 to index
    %c0_166 = arith.constant 0 : index
    %c0_167 = arith.constant 0 : index
    %329 = vector.load %arg4[%328, %c0_166, %c0_167] : memref<8x16x128xf32, #tpu.memory_space<vmem>>, vector<1x16x128xf32>
    %330 = vector.shape_cast %329 : vector<1x16x128xf32> to vector<16x128xf32>
    %331 = vector.shape_cast %325 : vector<16x128xf32> to vector<1x16x128xf32>
    tpu.vector_store %arg4[%328, %c0_166, %c0_167], %331 {strides = array<i32>} : memref<8x16x128xf32, #tpu.memory_space<vmem>>, vector<1x16x128xf32>,
    %c7_i32 = arith.constant 7 : i32
    %c0_168 = arith.constant 0 : index
    %c0_169 = arith.constant 0 : index
    %332 = vector.load %arg5[%c0_168, %c0_169] : memref<16x128xf32, #tpu.memory_space<vmem>>, vector<16x128xf32>
    %333 = arith.truncf %332 : vector<16x128xf32> to vector<16x128xbf16>
    %334 = arith.index_cast %c7_i32 : i32 to index
    %c0_170 = arith.constant 0 : index
    %c0_171 = arith.constant 0 : index
    %335 = vector.load %arg2[%334, %c0_170, %c0_171] : memref<8x16x512xbf16, #tpu.memory_space<vmem>>, vector<1x16x512xbf16>
    %336 = vector.shape_cast %335 : vector<1x16x512xbf16> to vector<16x512xbf16>
    %337 = arith.extf %336 : vector<16x512xbf16> to vector<16x512xf32>
    %c0_172 = arith.constant 0 : index
    %c0_173 = arith.constant 0 : index
    %338 = vector.load %arg3[%c0_172, %c0_173] : memref<128x512xbf16, #tpu.memory_space<vmem>>, vector<128x512xbf16>
    %cst_174 = arith.constant dense<0.000000e+00> : vector<16x512xf32>
    %339 = tpu.matmul %333, %338, %cst_174 {dimension_numbers = #tpu.dot_dimension_numbers<[1], [0], [0], [1], [0, 0, 1, 1], [], []>} : vector<16x128xbf16>, vector<128x512xbf16>, vector<16x512xf32> -> vector<16x512xf32>
    %340 = arith.addf %337, %339 : vector<16x512xf32>
    %341 = vector.extract_strided_slice %340 {offsets = [0, 0], sizes = [16, 128], strides = [1, 1]} : vector<16x512xf32> to vector<16x128xf32>
    %cst_175 = arith.constant 5.000000e-01 : f32
    %342 = vector.broadcast %cst_175 : f32 to vector<16x128xf32>
    %343 = arith.mulf %342, %341 : vector<16x128xf32>
    %344 = math.tanh %343 : vector<16x128xf32>
    %cst_176 = arith.constant 5.000000e-01 : f32
    %345 = vector.broadcast %cst_176 : f32 to vector<16x128xf32>
    %346 = arith.mulf %345, %344 : vector<16x128xf32>
    %cst_177 = arith.constant 5.000000e-01 : f32
    %347 = vector.broadcast %cst_177 : f32 to vector<16x128xf32>
    %348 = arith.addf %346, %347 : vector<16x128xf32>
    %349 = vector.extract_strided_slice %340 {offsets = [0, 128], sizes = [16, 128], strides = [1, 1]} : vector<16x512xf32> to vector<16x128xf32>
    %cst_178 = arith.constant 5.000000e-01 : f32
    %350 = vector.broadcast %cst_178 : f32 to vector<16x128xf32>
    %351 = arith.mulf %350, %349 : vector<16x128xf32>
    %352 = math.tanh %351 : vector<16x128xf32>
    %cst_179 = arith.constant 5.000000e-01 : f32
    %353 = vector.broadcast %cst_179 : f32 to vector<16x128xf32>
    %354 = arith.mulf %353, %352 : vector<16x128xf32>
    %cst_180 = arith.constant 5.000000e-01 : f32
    %355 = vector.broadcast %cst_180 : f32 to vector<16x128xf32>
    %356 = arith.addf %354, %355 : vector<16x128xf32>
    %357 = vector.extract_strided_slice %340 {offsets = [0, 256], sizes = [16, 128], strides = [1, 1]} : vector<16x512xf32> to vector<16x128xf32>
    %358 = math.tanh %357 : vector<16x128xf32>
    %359 = vector.extract_strided_slice %340 {offsets = [0, 384], sizes = [16, 128], strides = [1, 1]} : vector<16x512xf32> to vector<16x128xf32>
    %cst_181 = arith.constant 5.000000e-01 : f32
    %360 = vector.broadcast %cst_181 : f32 to vector<16x128xf32>
    %361 = arith.mulf %360, %359 : vector<16x128xf32>
    %362 = math.tanh %361 : vector<16x128xf32>
    %cst_182 = arith.constant 5.000000e-01 : f32
    %363 = vector.broadcast %cst_182 : f32 to vector<16x128xf32>
    %364 = arith.mulf %363, %362 : vector<16x128xf32>
    %cst_183 = arith.constant 5.000000e-01 : f32
    %365 = vector.broadcast %cst_183 : f32 to vector<16x128xf32>
    %366 = arith.addf %364, %365 : vector<16x128xf32>
    %c0_184 = arith.constant 0 : index
    %c0_185 = arith.constant 0 : index
    %367 = vector.load %arg6[%c0_184, %c0_185] : memref<16x128xf32, #tpu.memory_space<vmem>>, vector<16x128xf32>
    %368 = arith.mulf %356, %367 : vector<16x128xf32>
    %369 = arith.mulf %348, %358 : vector<16x128xf32>
    %370 = arith.addf %368, %369 : vector<16x128xf32>
    %371 = math.tanh %370 : vector<16x128xf32>
    %372 = arith.mulf %366, %371 : vector<16x128xf32>
    %c0_186 = arith.constant 0 : index
    %c0_187 = arith.constant 0 : index
    %373 = vector.load %arg5[%c0_186, %c0_187] : memref<16x128xf32, #tpu.memory_space<vmem>>, vector<16x128xf32>
    tpu.vector_store %arg5[%c0_186, %c0_187], %372 {strides = array<i32>} : memref<16x128xf32, #tpu.memory_space<vmem>>, vector<16x128xf32>,
    %c0_188 = arith.constant 0 : index
    %c0_189 = arith.constant 0 : index
    %374 = vector.load %arg6[%c0_188, %c0_189] : memref<16x128xf32, #tpu.memory_space<vmem>>, vector<16x128xf32>
    tpu.vector_store %arg6[%c0_188, %c0_189], %370 {strides = array<i32>} : memref<16x128xf32, #tpu.memory_space<vmem>>, vector<16x128xf32>,
    %375 = arith.index_cast %c7_i32 : i32 to index
    %c0_190 = arith.constant 0 : index
    %c0_191 = arith.constant 0 : index
    %376 = vector.load %arg4[%375, %c0_190, %c0_191] : memref<8x16x128xf32, #tpu.memory_space<vmem>>, vector<1x16x128xf32>
    %377 = vector.shape_cast %376 : vector<1x16x128xf32> to vector<16x128xf32>
    %378 = vector.shape_cast %372 : vector<16x128xf32> to vector<1x16x128xf32>
    tpu.vector_store %arg4[%375, %c0_190, %c0_191], %378 {strides = array<i32>} : memref<8x16x128xf32, #tpu.memory_space<vmem>>, vector<1x16x128xf32>,
    %c8_i32 = arith.constant 8 : i32
    return
  }
  func.func @transform_0(%arg0: i32, %arg1: i32) -> (i32, i32, i32) {
    %c0_i32 = arith.constant 0 : i32
    %c0_i32_0 = arith.constant 0 : i32
    return %arg1, %arg0, %c0_i32 : i32, i32, i32
  }
  func.func @transform_1(%arg0: i32, %arg1: i32) -> (i32, i32) {
    %c0_i32 = arith.constant 0 : i32
    %c0_i32_0 = arith.constant 0 : i32
    %c0_i32_1 = arith.constant 0 : i32
    return %c0_i32, %c0_i32_0 : i32, i32
  }
  func.func @transform_2(%arg0: i32, %arg1: i32) -> (i32, i32, i32) {
    %c0_i32 = arith.constant 0 : i32
    %c0_i32_0 = arith.constant 0 : i32
    return %arg1, %arg0, %c0_i32 : i32, i32, i32
  }
}

</mosaic_0001>

<bundles_post_ra>
// kernel: tpu_custom_call.1
= control target key start
LH: loop header
LB: loop body
LE: loop exit
PB: predicated region body
PF: predicated region fallthrough
CT: control target
= control target key end

     0   :  { %7 = vsyncpa [#allocation5], 0  ;;  %s3950_s0 = inlined_call_operand.hbm [shape: bf16[8,16,512], index: 0, kind: input, shape index: {}]   ;;  %s3951_s1 = inlined_call_operand.hbm [shape: bf16[128,512], index: 1, kind: input, shape index: {}]   ;;  %s3952_s2 = inlined_call_operand.hbm [shape: f32[8,16,128], index: 2, kind: output, shape index: {}]  }
   0x1   :  { %8 = vsyncpa [#allocation8], 0 }
   0x2   :  { %9 = vsyncpa [#allocation6], 0  ;;  %s3434_s9 = smov [#allocation4]   ;;  %s3362_s13 = scalar_lea.hbm %s3950_s0, 4096 }
   0x3   :  { %s15_s10 = sshll.u32 %s3434_s9, 4  ;;  %p3363_p0 = scmp.ne.s32.totalorder %s3950_s0, %s3362_s13  ;;  %s16_s10 = int_to_ptr.vmem [resolvable:$true] %s15_s10 }
   0x4   :  { %p3366_p1 = scmp.lt.u32.totalorder %s3362_s13, %s3950_s0 }
   0x6   :  { %p3368_p2 = pnand %p3366_p1, %p3363_p0 }
   0x8   :  { %3371 = shalt.err (!%p3368_p2)
}
   0x9   :  { %s3372_s18 = scalar_lea.vmem %s16_s10, 4096  ;;  %p3377_p4 = scmp.lt.s32.totalorder %s16_s10, %s16_s10 }
   0xa   :  { %p3373_p3 = scmp.ne.s32.totalorder %s16_s10, %s3372_s18  ;;  %p3378_p5 = scmp.lt.s32.totalorder %s3372_s18, %s3372_s18 }
   0xc   :  { %p3379_p6 = por %p3378_p5, %p3377_p4 }
   0xe   :  { %p3380_p7 = pnand %p3379_p6, %p3373_p3 }
  0x10   :  { %3383 = shalt.err (!%p3380_p7)
}
  0x11   :  { %s3435_s19 = smov 256   ;;  %s3436_s20 = smov 16  }
  0x12   :  { %21 = dma.hbm_to_vmem [thread:$0]  %s3950_s0, 4096, %s16_s10, [#allocation5], %s3435_s19, %s3435_s19, %s3436_s20  }
  0x13   :  { %s3437_s23 = smov [#allocation7]   ;;  %s3384_s27 = scalar_lea.hbm %s3951_s1, 4096 }
  0x14   :  { %s27_s24 = sshll.u32 %s3437_s23, 4  ;;  %p3385_p8 = scmp.ne.s32.totalorder %s3951_s1, %s3384_s27  ;;  %s28_s24 = int_to_ptr.vmem [resolvable:$true] %s27_s24 }
  0x15   :  { %p3388_p9 = scmp.lt.u32.totalorder %s3384_s27, %s3951_s1 }
  0x17   :  { %p3390_p10 = pnand %p3388_p9, %p3385_p8 }
  0x19   :  { %3393 = shalt.err (!%p3390_p10)
}
  0x1a   :  { %s3394_s4 = scalar_lea.vmem %s28_s24, 4096  ;;  %p3399_p12 = scmp.lt.s32.totalorder %s28_s24, %s28_s24 }
  0x1b   :  { %p3395_p11 = scmp.ne.s32.totalorder %s28_s24, %s3394_s4  ;;  %p3400_p13 = scmp.lt.s32.totalorder %s3394_s4, %s3394_s4 }
  0x1d   :  { %p3401_p0 = por %p3400_p13, %p3399_p12 }
  0x1f   :  { %p3402_p1 = pnand %p3401_p0, %p3395_p11 }
  0x21   :  { %3405 = shalt.err (!%p3402_p1)
}
  0x22   :  { %33 = dma.hbm_to_vmem [thread:$0]  %s3951_s1, 4096, %s28_s24, [#allocation8], %s3435_s19, %s3435_s19, %s3436_s20  }
  0x23   :  { %3428 = dma.done.wait [#allocation5], 4096  }
  0x24   :  { %3429 = vsyncadd [#allocation5], 4294963200 }
  0x25   :  { %3430 = dma.done.wait [#allocation8], 4096  }
  0x26   :  { %3431 = vsyncadd [#allocation8], 4294963200  ;;  %v3438_v0 = vmov 0   ;;  %v3484_v1 = vld [vmem:[#allocation7 + $0x4] ss:$16 sps:$4 sm:$0xff]   ;;  %v3439_v33 = vmov 0.0|0.0  }
  0x27   :  { %288 = vmatprep.mubr.bf16.mxu0 %v3438_v0  ;;  %331 = vmatprep.mubr.bf16.mxu1 %v3438_v0  ;;  %v3486_v2 = vld [vmem:[#allocation7] ss:$16 sps:$4 sm:$0xff]   ;;  %v3489_v3 = vld [vmem:[#allocation7 + $0x24] ss:$16 sps:$4 sm:$0xff]   ;;  %v3492_v4 = vld [vmem:[#allocation7 + $0xc] ss:$16 sps:$4 sm:$0xff]  }
  0x28   :  { %256 = vmatprep.subr.bf16.mxu0 %v3484_v1  ;;  %v3494_v5 = vld [vmem:[#allocation7 + $0x20] ss:$16 sps:$4 sm:$0xff]   ;;  %v3496_v6 = vld [vmem:[#allocation7 + $0x8] ss:$16 sps:$4 sm:$0xff]   ;;  %v3499_v7 = vld [vmem:[#allocation7 + $0x44] ss:$16 sps:$4 sm:$0xff]   ;;  %299 = vmatprep.subr.bf16.mxu1 %v3492_v4 }
  0x29   :  { %257 = vmatpush1.bf16.msra.mxu0 %v3486_v2  ;;  %v3502_v8 = vld [vmem:[#allocation7 + $0x2c] ss:$16 sps:$4 sm:$0xff]   ;;  %300 = vmatpush1.bf16.msra.mxu1 %v3496_v6  ;;  %v3505_v9 = vld [vmem:[#allocation7 + $0x28] ss:$16 sps:$4 sm:$0xff]   ;;  %v3509_v10 = vld [vmem:[#allocation7 + $0x40] ss:$16 sps:$4 sm:$0xff]  }
  0x2a   :  { %258 = vmatprep.subr.bf16.mxu0 %v3489_v3  ;;  %301 = vmatprep.subr.bf16.mxu1 %v3502_v8  ;;  %v3512_v11 = vld [vmem:[#allocation7 + $0x64] ss:$16 sps:$4 sm:$0xff]   ;;  %v3514_v12 = vld [vmem:[#allocation7 + $0x4c] ss:$16 sps:$4 sm:$0xff]   ;;  %v3517_v13 = vld [vmem:[#allocation7 + $0x48] ss:$16 sps:$4 sm:$0xff]  }
  0x2b   :  { %v3521_v14 = vld [vmem:[#allocation7 + $0x60] ss:$16 sps:$4 sm:$0xff]   ;;  %v3523_v15 = vld [vmem:[#allocation7 + $0x6c] ss:$16 sps:$4 sm:$0xff]   ;;  %v3526_v16 = vld [vmem:[#allocation7 + $0x84] ss:$16 sps:$4 sm:$0xff]  }
  0x2c   :  { %v3529_v17 = vld [vmem:[#allocation7 + $0x80] ss:$16 sps:$4 sm:$0xff]   ;;  %v3531_v18 = vld [vmem:[#allocation7 + $0x68] ss:$16 sps:$4 sm:$0xff]   ;;  %v3535_v19 = vld [vmem:[#allocation7 + $0x8c] ss:$16 sps:$4 sm:$0xff]  }
  0x2d   :  { %259 = vmatpush1.bf16.msra.mxu0 %v3494_v5  ;;  %302 = vmatpush1.bf16.msra.mxu1 %v3505_v9  ;;  %v3538_v20 = vld [vmem:[#allocation7 + $0xa4] ss:$16 sps:$4 sm:$0xff]   ;;  %v3541_v21 = vld [vmem:[#allocation7 + $0x88] ss:$16 sps:$4 sm:$0xff]   ;;  %v3545_v22 = vld [vmem:[#allocation7 + $0xa0] ss:$16 sps:$4 sm:$0xff]  }
  0x2e   :  { %260 = vmatprep.subr.bf16.mxu0 %v3499_v7  ;;  %303 = vmatprep.subr.bf16.mxu1 %v3514_v12  ;;  %v3547_v23 = vld [vmem:[#allocation7 + $0xac] ss:$16 sps:$4 sm:$0xff]   ;;  %v3550_v24 = vld [vmem:[#allocation7 + $0xc4] ss:$16 sps:$4 sm:$0xff]   ;;  %v3552_v25 = vld [vmem:[#allocation7 + $0xc0] ss:$16 sps:$4 sm:$0xff]  }
  0x2f   :  { %v3554_v26 = vld [vmem:[#allocation7 + $0xa8] ss:$16 sps:$4 sm:$0xff]   ;;  %v3556_v27 = vld [vmem:[#allocation7 + $0xcc] ss:$16 sps:$4 sm:$0xff]   ;;  %v3559_v28 = vld [vmem:[#allocation7 + $0xe4] ss:$16 sps:$4 sm:$0xff]  }
  0x30   :  { %v3564_v29 = vld [vmem:[#allocation7 + $0xc8] ss:$16 sps:$4 sm:$0xff]   ;;  %v3566_v30 = vld [vmem:[#allocation7 + $0xe0] ss:$16 sps:$4 sm:$0xff]   ;;  %v3568_v31 = vld [vmem:[#allocation7 + $0xec] ss:$16 sps:$4 sm:$0xff]  }
  0x31   :  { %261 = vmatpush1.bf16.msra.mxu0 %v3509_v10  ;;  %304 = vmatpush1.bf16.msra.mxu1 %v3517_v13  ;;  %v3574_v32 = vld [vmem:[#allocation7 + $0xe8] ss:$16 sps:$4 sm:$0xff]   ;;  %v52_v34 = vld [vmem:[#allocation4] sm:$0xff]  ;;  %v54_v35 = vld [vmem:[#allocation4 + $0x10] sm:$0xff]  ;;  %s3440_s1 = smov [#allocation9]  }
  0x32   :  { %262 = vmatprep.subr.bf16.mxu0 %v3512_v11  ;;  %305 = vmatprep.subr.bf16.mxu1 %v3523_v15  ;;  %v56_v36 = vunpack.c.l.bf16 %v52_v34  ;;  %v57_v37 = vunpack.c.h.bf16 %v52_v34  ;;  %v53_v38 = vld [vmem:[#allocation4 + $0x8] sm:$0xff]  ;;  %v60_v39 = vunpack.c.l.bf16 %v54_v35  ;;  %v61_v41 = vunpack.c.h.bf16 %v54_v35  ;;  %v55_v42 = vld [vmem:[#allocation4 + $0x18] sm:$0xff]  ;;  %s2828_s6 = sshll.u32 %s3440_s1, 4  ;;  %s2829_s6 = int_to_ptr.vmem [resolvable:$true] %s2828_s6 }
  0x33   :  { %v58_v45 = vunpack.c.l.bf16 %v53_v38  ;;  %v62_v52 = vunpack.c.l.bf16 %v55_v42  ;;  %v59_v58 = vunpack.c.h.bf16 %v53_v38  ;;  %v63_v63 = vunpack.c.h.bf16 %v55_v42  ;;  %s3406_s7 = scalar_lea.vmem %s2829_s6, 2048  ;;  %p3411_p3 = scmp.lt.s32.totalorder %s2829_s6, %s2829_s6 }
  0x34   :  { %p3407_p2 = scmp.ne.s32.totalorder %s2829_s6, %s3406_s7  ;;  %p3412_p4 = scmp.lt.s32.totalorder %s3406_s7, %s3406_s7 }
  0x35   :  { %263 = vmatpush1.bf16.msra.mxu0 %v3521_v14  ;;  %306 = vmatpush1.bf16.msra.mxu1 %v3531_v18 }
  0x36   :  { %264 = vmatprep.subr.bf16.mxu0 %v3526_v16  ;;  %307 = vmatprep.subr.bf16.mxu1 %v3535_v19  ;;  %p3413_p5 = por %p3412_p4, %p3411_p3 }
  0x38   :  { %p3414_p6 = pnand %p3413_p5, %p3407_p2 }
  0x39   :  { %265 = vmatpush1.bf16.msra.mxu0 %v3529_v17  ;;  %308 = vmatpush1.bf16.msra.mxu1 %v3541_v21 }
  0x3a   :  { %266 = vmatprep.subr.bf16.mxu0 %v3538_v20  ;;  %309 = vmatprep.subr.bf16.mxu1 %v3547_v23 }
  0x3d   :  { %267 = vmatpush1.bf16.msra.mxu0 %v3545_v22  ;;  %310 = vmatpush1.bf16.msra.mxu1 %v3554_v26 }
  0x3e   :  { %268 = vmatprep.subr.bf16.mxu0 %v3550_v24  ;;  %311 = vmatprep.subr.bf16.mxu1 %v3556_v27 }
  0x41   :  { %269 = vmatpush1.bf16.msra.mxu0 %v3552_v25  ;;  %312 = vmatpush1.bf16.msra.mxu1 %v3564_v29 }
  0x42   :  { %270 = vmatprep.subr.bf16.mxu0 %v3559_v28  ;;  %313 = vmatprep.subr.bf16.mxu1 %v3568_v31 }
  0x45   :  { %271 = vmatpush1.bf16.msra.mxu0 %v3566_v30  ;;  %314 = vmatpush1.bf16.msra.mxu1 %v3574_v32 }
  0x46   :  { %602 = vmatprep.subr.bf16.mxu0 %v3484_v1  ;;  %645 = vmatprep.subr.bf16.mxu1 %v3492_v4 }
  0x48   :  { %289 = vmatmul.mubr.bf16.vlgmr.msra.gmra.mrb[0].mxu0 %v3439_v33  ;;  %332 = vmatmul.mubr.bf16.vlgmr.msra.gmra.mrb[0].mxu1 %v3439_v33 }
  0x49   :  { %603 = vmatpush1.bf16.msra.mxu0 %v3486_v2  ;;  %634 = vmatprep.mubr.bf16.mxu0 %v3438_v0 }
  0x4a   :  { %604 = vmatprep.subr.bf16.mxu0 %v3489_v3  ;;  %646 = vmatpush1.bf16.msra.mxu1 %v3496_v6 }
  0x4b   :  { %677 = vmatprep.mubr.bf16.mxu1 %v3438_v0  ;;  %647 = vmatprep.subr.bf16.mxu1 %v3502_v8 }
  0x4d   :  { %605 = vmatpush1.bf16.msra.mxu0 %v3494_v5 }
  0x4e   :  { %606 = vmatprep.subr.bf16.mxu0 %v3499_v7  ;;  %648 = vmatpush1.bf16.msra.mxu1 %v3505_v9 }
  0x4f   :  { %649 = vmatprep.subr.bf16.mxu1 %v3514_v12 }
  0x51   :  { %607 = vmatpush1.bf16.msra.mxu0 %v3509_v10 }
  0x52   :  { %608 = vmatprep.subr.bf16.mxu0 %v3512_v11  ;;  %650 = vmatpush1.bf16.msra.mxu1 %v3517_v13 }
  0x53   :  { %651 = vmatprep.subr.bf16.mxu1 %v3523_v15 }
  0x55   :  { %609 = vmatpush1.bf16.msra.mxu0 %v3521_v14 }
  0x56   :  { %610 = vmatprep.subr.bf16.mxu0 %v3526_v16  ;;  %652 = vmatpush1.bf16.msra.mxu1 %v3531_v18 }
  0x57   :  { %653 = vmatprep.subr.bf16.mxu1 %v3535_v19 }
  0x59   :  { %611 = vmatpush1.bf16.msra.mxu0 %v3529_v17 }
  0x5a   :  { %612 = vmatprep.subr.bf16.mxu0 %v3538_v20  ;;  %654 = vmatpush1.bf16.msra.mxu1 %v3541_v21 }
  0x5b   :  { %655 = vmatprep.subr.bf16.mxu1 %v3547_v23 }
  0x5d   :  { %613 = vmatpush1.bf16.msra.mxu0 %v3545_v22 }
  0x5e   :  { %614 = vmatprep.subr.bf16.mxu0 %v3550_v24  ;;  %656 = vmatpush1.bf16.msra.mxu1 %v3554_v26 }
  0x5f   :  { %657 = vmatprep.subr.bf16.mxu1 %v3556_v27 }
  0x61   :  { %615 = vmatpush1.bf16.msra.mxu0 %v3552_v25 }
  0x62   :  { %616 = vmatprep.subr.bf16.mxu0 %v3559_v28  ;;  %658 = vmatpush1.bf16.msra.mxu1 %v3564_v29 }
  0x63   :  { %659 = vmatprep.subr.bf16.mxu1 %v3568_v31 }
  0x65   :  { %617 = vmatpush1.bf16.msra.mxu0 %v3566_v30 }
  0x66   :  { %949 = vmatprep.subr.bf16.mxu0 %v3484_v1  ;;  %660 = vmatpush1.bf16.msra.mxu1 %v3574_v32 }
  0x67   :  { %992 = vmatprep.subr.bf16.mxu1 %v3492_v4 }
 0x11b   :  { %v290_v40 = vpop.f32.mrb[0].mxu0  ;;  %v333_v51 = vpop.f32.mrb[0].mxu1 }
 0x11c   :  { %v342_v43 = vadd.f32 %v290_v40, %v56_v36  ;;  %v292_v44 = vpop.f32.mrb[1].mxu0  ;;  %v335_v55 = vpop.f32.mrb[1].mxu1  ;;  %v344_v57 = vadd.f32 %v333_v51, %v58_v45 }
 0x11d   :  { %v343_v46 = vadd.f32 %v292_v44, %v57_v37  ;;  %v294_v47 = vpop.f32.mrb[2].mxu0  ;;  %v337_v59 = vpop.f32.mrb[2].mxu1  ;;  %v345_v33 = vadd.f32 %v335_v55, %v59_v58 }
 0x11e   :  { %v350_v48 = vmul.f32 0.5, %v342_v43  ;;  %v346_v49 = vadd.f32 %v294_v47, %v60_v39  ;;  %v296_v50 = vpop.f32.mrb[3].mxu0  ;;  %v339_v61 = vpop.f32.mrb[3].mxu1  ;;  %v348_v62 = vadd.f32 %v337_v59, %v62_v52 }
 0x11f   :  { %v358_v53 = vmul.f32 0.5, %v343_v46  ;;  %v347_v54 = vadd.f32 %v296_v50, %v61_v41  ;;  %v349_v34 = vadd.f32 %v339_v61, %v63_v63  ;;  %v368_v35 = vmul.f32 0.5, %v345_v33 }
 0x120   :  { %3202 = vtanh.f32 %v350_v48  ;;  %v351_v56 = vmul.f32 0.5, %v346_v49 }
 0x121   :  { %3204 = vtanh.f32 %v358_v53  ;;  %v359_v60 = vmul.f32 0.5, %v347_v54  ;;  %v369_v37 = vmul.f32 0.5, %v349_v34 }
 0x122   :  { %3206 = vtanh.f32 %v351_v56 }
 0x123   :  { %3208 = vtanh.f32 %v359_v60 }
 0x124   :  { %3210 = vtanh.f32 %v344_v57 }
 0x125   :  { %3212 = vtanh.f32 %v348_v62 }
 0x126   :  { %3214 = vtanh.f32 %v368_v35 }
 0x127   :  { %3216 = vtanh.f32 %v369_v37  ;;  %v398_v37 = vld [vmem:[#allocation4 + $0x20] sm:$0xff] }
 0x12a   :  { %v3203_v36 = vpop.eup %3202 }
 0x12b   :  { %v3205_v39 = vpop.eup %3204  ;;  %v354_v40 = vmul.f32 0.5, %v3203_v36 }
 0x12c   :  { %v3207_v41 = vpop.eup %3206  ;;  %v362_v43 = vmul.f32 0.5, %v3205_v39  ;;  %v400_v39 = vld [vmem:[#allocation4 + $0x30] sm:$0xff] }
 0x12d   :  { %v3209_v38 = vpop.eup %3208  ;;  %v356_v44 = vadd.f32 0.5, %v354_v40  ;;  %v355_v45 = vmul.f32 0.5, %v3207_v41  ;;  %v402_v40 = vunpack.c.l.bf16 %v398_v37  ;;  %v399_v41 = vld [vmem:[#allocation4 + $0x28] sm:$0xff] }
 0x12e   :  { %v3211_v46 = vpop.eup %3210  ;;  %v364_v47 = vadd.f32 0.5, %v362_v43  ;;  %v363_v48 = vmul.f32 0.5, %v3209_v38  ;;  %v403_v43 = vunpack.c.h.bf16 %v398_v37  ;;  %v406_v38 = vunpack.c.l.bf16 %v400_v39 }
 0x12f   :  { %v357_v42 = vadd.f32 0.5, %v355_v45  ;;  %v380_v49 = vmul.f32 %v3211_v46, %v356_v44  ;;  %v3213_v50 = vpop.eup %3212  ;;  %v407_v46 = vunpack.c.h.bf16 %v400_v39 }
 0x130   :  { %v378_v51 = vmul.f32 0.0, %v364_v47  ;;  %v365_v52 = vadd.f32 0.5, %v363_v48  ;;  %v3215_v57 = vpop.eup %3214  ;;  %v404_v48 = vunpack.c.l.bf16 %v399_v41 }
 0x131   :  { %v381_v53 = vmul.f32 %v3213_v50, %v357_v42  ;;  %v3217_v58 = vpop.eup %3216  ;;  %v372_v59 = vmul.f32 0.5, %v3215_v57  ;;  %v401_v50 = vld [vmem:[#allocation4 + $0x38] sm:$0xff] }
 0x132   :  { %v379_v54 = vmul.f32 0.0, %v365_v52  ;;  %v3616_v55 = vadd.f32 %v380_v49, %v378_v51  ;;  %v373_v60 = vmul.f32 0.5, %v3217_v58 }
 0x133   :  { %v374_v61 = vadd.f32 0.5, %v372_v59  ;;  %v408_v59 = vunpack.c.l.bf16 %v401_v50 }
 0x134   :  { %3218 = vtanh.f32 %v3616_v55  ;;  %v3619_v56 = vadd.f32 %v381_v53, %v379_v54  ;;  %v375_v33 = vadd.f32 0.5, %v373_v60 }
 0x136   :  { %3220 = vtanh.f32 %v3619_v56 }
 0x13e   :  { %v3219_v62 = vpop.eup %3218 }
 0x13f   :  { %v386_v63 = vmul.f32 %v3219_v62, %v374_v61  ;;  %v405_v62 = vunpack.c.h.bf16 %v399_v41 }
 0x140   :  { %v3221_v34 = vpop.eup %3220 }
 0x141   :  { %392 = vst [vmem:[#allocation9] sm:$0xff] %v386_v63  ;;  %v387_v35 = vmul.f32 %v3221_v34, %v375_v33 }
 0x143   :  { %393 = vst [vmem:[#allocation9 + $0x8] sm:$0xff] %v387_v35  ;;  %v396_v36 = vpack.c.bf16 %v387_v35, %v386_v63 }
 0x145   :  { %635 = vmatmul.mubr.bf16.vlgmr.msra.gmra.mrb[4].mxu0 %v396_v36  ;;  %678 = vmatmul.mubr.bf16.vlgmr.msra.gmra.mrb[4].mxu1 %v396_v36  ;;  %v409_v36 = vunpack.c.h.bf16 %v401_v50 }
 0x146   :  { %950 = vmatpush1.bf16.msra.mxu0 %v3486_v2  ;;  %993 = vmatpush1.bf16.msra.mxu1 %v3496_v6 }
 0x147   :  { %951 = vmatprep.subr.bf16.mxu0 %v3489_v3  ;;  %994 = vmatprep.subr.bf16.mxu1 %v3502_v8 }
 0x148   :  { %981 = vmatprep.mubr.bf16.mxu0 %v3438_v0  ;;  %1024 = vmatprep.mubr.bf16.mxu1 %v3438_v0 }
 0x14a   :  { %952 = vmatpush1.bf16.msra.mxu0 %v3494_v5  ;;  %995 = vmatpush1.bf16.msra.mxu1 %v3505_v9 }
 0x14b   :  { %953 = vmatprep.subr.bf16.mxu0 %v3499_v7  ;;  %996 = vmatprep.subr.bf16.mxu1 %v3514_v12 }
 0x14e   :  { %954 = vmatpush1.bf16.msra.mxu0 %v3509_v10  ;;  %997 = vmatpush1.bf16.msra.mxu1 %v3517_v13 }
 0x14f   :  { %955 = vmatprep.subr.bf16.mxu0 %v3512_v11  ;;  %998 = vmatprep.subr.bf16.mxu1 %v3523_v15 }
 0x152   :  { %956 = vmatpush1.bf16.msra.mxu0 %v3521_v14  ;;  %999 = vmatpush1.bf16.msra.mxu1 %v3531_v18 }
 0x153   :  { %957 = vmatprep.subr.bf16.mxu0 %v3526_v16  ;;  %1000 = vmatprep.subr.bf16.mxu1 %v3535_v19 }
 0x156   :  { %958 = vmatpush1.bf16.msra.mxu0 %v3529_v17  ;;  %1001 = vmatpush1.bf16.msra.mxu1 %v3541_v21 }
 0x157   :  { %959 = vmatprep.subr.bf16.mxu0 %v3538_v20  ;;  %1002 = vmatprep.subr.bf16.mxu1 %v3547_v23 }
 0x15a   :  { %960 = vmatpush1.bf16.msra.mxu0 %v3545_v22  ;;  %1003 = vmatpush1.bf16.msra.mxu1 %v3554_v26 }
 0x15b   :  { %961 = vmatprep.subr.bf16.mxu0 %v3550_v24  ;;  %1004 = vmatprep.subr.bf16.mxu1 %v3556_v27 }
 0x15e   :  { %962 = vmatpush1.bf16.msra.mxu0 %v3552_v25  ;;  %1005 = vmatpush1.bf16.msra.mxu1 %v3564_v29 }
 0x15f   :  { %963 = vmatprep.subr.bf16.mxu0 %v3559_v28  ;;  %1006 = vmatprep.subr.bf16.mxu1 %v3568_v31 }
 0x162   :  { %964 = vmatpush1.bf16.msra.mxu0 %v3566_v30  ;;  %1007 = vmatpush1.bf16.msra.mxu1 %v3574_v32 }
 0x163   :  { %1296 = vmatprep.subr.bf16.mxu0 %v3484_v1  ;;  %1339 = vmatprep.subr.bf16.mxu1 %v3492_v4 }
 0x218   :  { %v636_v44 = vpop.f32.mrb[4].mxu0  ;;  %v679_v45 = vpop.f32.mrb[4].mxu1 }
 0x219   :  { %v688_v47 = vadd.f32 %v636_v44, %v402_v40  ;;  %v638_v42 = vpop.f32.mrb[5].mxu0  ;;  %v681_v49 = vpop.f32.mrb[5].mxu1  ;;  %v690_v61 = vadd.f32 %v679_v45, %v404_v48 }
 0x21a   :  { %v689_v51 = vadd.f32 %v638_v42, %v403_v43  ;;  %v640_v52 = vpop.f32.mrb[6].mxu0  ;;  %v683_v53 = vpop.f32.mrb[6].mxu1  ;;  %v691_v35 = vadd.f32 %v681_v49, %v405_v62 }
 0x21b   :  { %v696_v1 = vmul.f32 0.5, %v688_v47  ;;  %v692_v54 = vadd.f32 %v640_v52, %v406_v38  ;;  %v642_v4 = vpop.f32.mrb[7].mxu0  ;;  %v685_v57 = vpop.f32.mrb[7].mxu1  ;;  %v694_v34 = vadd.f32 %v683_v53, %v408_v59 }
 0x21c   :  { %v704_v58 = vmul.f32 0.5, %v689_v51  ;;  %v693_v60 = vadd.f32 %v642_v4, %v407_v46  ;;  %v714_v37 = vmul.f32 0.5, %v691_v35  ;;  %v695_v39 = vadd.f32 %v685_v57, %v409_v36 }
 0x21d   :  { %3222 = vtanh.f32 %v696_v1  ;;  %v697_v63 = vmul.f32 0.5, %v692_v54 }
 0x21e   :  { %3224 = vtanh.f32 %v704_v58  ;;  %v705_v33 = vmul.f32 0.5, %v693_v60  ;;  %v715_v46 = vmul.f32 0.5, %v695_v39 }
 0x21f   :  { %3226 = vtanh.f32 %v697_v63 }
 0x220   :  { %3228 = vtanh.f32 %v690_v61 }
 0x221   :  { %3230 = vtanh.f32 %v705_v33 }
 0x222   :  { %3232 = vtanh.f32 %v694_v34 }
 0x223   :  { %3234 = vtanh.f32 %v714_v37 }
 0x224   :  { %3236 = vtanh.f32 %v715_v46 }
 0x227   :  { %v3223_v40 = vpop.eup %3222 }
 0x228   :  { %v3225_v43 = vpop.eup %3224  ;;  %v700_v38 = vmul.f32 0.5, %v3223_v40 }
 0x229   :  { %v708_v44 = vmul.f32 0.5, %v3225_v43  ;;  %v3227_v45 = vpop.eup %3226 }
 0x22a   :  { %v702_v41 = vadd.f32 0.5, %v700_v38  ;;  %v3229_v47 = vpop.eup %3228  ;;  %v701_v42 = vmul.f32 0.5, %v3227_v45 }
 0x22b   :  { %v710_v48 = vadd.f32 0.5, %v708_v44  ;;  %v3231_v51 = vpop.eup %3230 }
 0x22c   :  { %v726_v52 = vmul.f32 %v3229_v47, %v702_v41  ;;  %v703_v50 = vadd.f32 0.5, %v701_v42  ;;  %v709_v53 = vmul.f32 0.5, %v3231_v51  ;;  %v3233_v1 = vpop.eup %3232 }
 0x22d   :  { %v724_v49 = vmul.f32 %v710_v48, %v3616_v55  ;;  %v3235_v59 = vpop.eup %3234 }
 0x22e   :  { %v711_v4 = vadd.f32 0.5, %v709_v53  ;;  %v727_v57 = vmul.f32 %v3233_v1, %v703_v50  ;;  %v718_v61 = vmul.f32 0.5, %v3235_v59  ;;  %v3237_v62 = vpop.eup %3236 }
 0x22f   :  { %v3657_v54 = vadd.f32 %v726_v52, %v724_v49  ;;  %v719_v63 = vmul.f32 0.5, %v3237_v62 }
 0x230   :  { %v725_v58 = vmul.f32 %v711_v4, %v3619_v56  ;;  %v720_v55 = vadd.f32 0.5, %v718_v61 }
 0x231   :  { %3238 = vtanh.f32 %v3657_v54  ;;  %v721_v35 = vadd.f32 0.5, %v719_v63 }
 0x232   :  { %v3661_v60 = vadd.f32 %v727_v57, %v725_v58 }
 0x234   :  { %3240 = vtanh.f32 %v3661_v60 }
 0x23b   :  { %v3239_v33 = vpop.eup %3238 }
 0x23c   :  { %v732_v34 = vmul.f32 %v3239_v33, %v720_v55 }
 0x23e   :  { %739 = vst [vmem:[#allocation9 + $0x10] sm:$0xff] %v732_v34  ;;  %v3241_v36 = vpop.eup %3240 }
 0x23f   :  { %v733_v37 = vmul.f32 %v3241_v36, %v721_v35 }
 0x241   :  { %740 = vst [vmem:[#allocation9 + $0x18] sm:$0xff] %v733_v37  ;;  %v743_v39 = vpack.c.bf16 %v733_v37, %v732_v34 }
 0x243   :  { %982 = vmatmul.mubr.bf16.vlgmr.msra.gmra.mrb[8].mxu0 %v743_v39  ;;  %1025 = vmatmul.mubr.bf16.vlgmr.msra.gmra.mrb[8].mxu1 %v743_v39 }
 0x244   :  { %1297 = vmatpush1.bf16.msra.mxu0 %v3486_v2  ;;  %1340 = vmatpush1.bf16.msra.mxu1 %v3496_v6  ;;  %v745_v2 = vld [vmem:[#allocation4 + $0x40] sm:$0xff]  ;;  %v746_v6 = vld [vmem:[#allocation4 + $0x48] sm:$0xff] }
 0x245   :  { %1298 = vmatprep.subr.bf16.mxu0 %v3489_v3  ;;  %1341 = vmatprep.subr.bf16.mxu1 %v3502_v8  ;;  %v747_v3 = vld [vmem:[#allocation4 + $0x50] sm:$0xff] }
 0x246   :  { %1328 = vmatprep.mubr.bf16.mxu0 %v3438_v0  ;;  %1371 = vmatprep.mubr.bf16.mxu1 %v3438_v0  ;;  %v753_v8 = vunpack.c.l.bf16 %v747_v3 }
 0x248   :  { %1299 = vmatpush1.bf16.msra.mxu0 %v3494_v5  ;;  %1342 = vmatpush1.bf16.msra.mxu1 %v3505_v9  ;;  %v749_v5 = vunpack.c.l.bf16 %v745_v2 }
 0x249   :  { %1300 = vmatprep.subr.bf16.mxu0 %v3499_v7  ;;  %1343 = vmatprep.subr.bf16.mxu1 %v3514_v12  ;;  %v750_v7 = vunpack.c.h.bf16 %v745_v2 }
 0x24c   :  { %1301 = vmatpush1.bf16.msra.mxu0 %v3509_v10  ;;  %1344 = vmatpush1.bf16.msra.mxu1 %v3517_v13  ;;  %v751_v13 = vunpack.c.l.bf16 %v746_v6 }
 0x24d   :  { %1302 = vmatprep.subr.bf16.mxu0 %v3512_v11  ;;  %1345 = vmatprep.subr.bf16.mxu1 %v3523_v15  ;;  %v754_v11 = vunpack.c.h.bf16 %v747_v3 }
 0x250   :  { %1303 = vmatpush1.bf16.msra.mxu0 %v3521_v14  ;;  %1346 = vmatpush1.bf16.msra.mxu1 %v3531_v18 }
 0x251   :  { %1304 = vmatprep.subr.bf16.mxu0 %v3526_v16  ;;  %1347 = vmatprep.subr.bf16.mxu1 %v3535_v19  ;;  %v748_v16 = vld [vmem:[#allocation4 + $0x58] sm:$0xff] }
 0x252   :  { %v756_v56 = vunpack.c.h.bf16 %v748_v16 }
 0x254   :  { %1305 = vmatpush1.bf16.msra.mxu0 %v3529_v17  ;;  %1348 = vmatpush1.bf16.msra.mxu1 %v3541_v21 }
 0x255   :  { %1306 = vmatprep.subr.bf16.mxu0 %v3538_v20  ;;  %1349 = vmatprep.subr.bf16.mxu1 %v3547_v23 }
 0x258   :  { %1307 = vmatpush1.bf16.msra.mxu0 %v3545_v22  ;;  %1350 = vmatpush1.bf16.msra.mxu1 %v3554_v26 }
 0x259   :  { %1308 = vmatprep.subr.bf16.mxu0 %v3550_v24  ;;  %1351 = vmatprep.subr.bf16.mxu1 %v3556_v27 }
 0x25c   :  { %1309 = vmatpush1.bf16.msra.mxu0 %v3552_v25  ;;  %1352 = vmatpush1.bf16.msra.mxu1 %v3564_v29  ;;  %v755_v25 = vunpack.c.l.bf16 %v748_v16  ;;  %v3736_v16 = vld [vmem:[#allocation7 + $0x48] ss:$16 sps:$4 sm:$0xff]  }
 0x25d   :  { %1310 = vmatprep.subr.bf16.mxu0 %v3559_v28  ;;  %1353 = vmatprep.subr.bf16.mxu1 %v3568_v31  ;;  %v752_v28 = vunpack.c.h.bf16 %v746_v6  ;;  %v3708_v6 = vld [vmem:[#allocation7 + $0xc] ss:$16 sps:$4 sm:$0xff]  }
 0x260   :  { %1311 = vmatpush1.bf16.msra.mxu0 %v3566_v30  ;;  %1354 = vmatpush1.bf16.msra.mxu1 %v3574_v32 }
 0x261   :  { %1686 = vmatprep.subr.bf16.mxu1 %v3708_v6 }
 0x316   :  { %v983_v9 = vpop.f32.mrb[8].mxu0  ;;  %v1026_v10 = vpop.f32.mrb[8].mxu1 }
 0x317   :  { %v1035_v12 = vadd.f32 %v983_v9, %v749_v5  ;;  %v985_v14 = vpop.f32.mrb[9].mxu0  ;;  %v1028_v15 = vpop.f32.mrb[9].mxu1  ;;  %v1037_v27 = vadd.f32 %v1026_v10, %v751_v13  ;;  %v3718_v9 = vld [vmem:[#allocation7 + $0x24] ss:$16 sps:$4 sm:$0xff]   ;;  %v3720_v10 = vld [vmem:[#allocation7 + $0x2c] ss:$16 sps:$4 sm:$0xff]  }
 0x318   :  { %v1036_v17 = vadd.f32 %v985_v14, %v750_v7  ;;  %v987_v18 = vpop.f32.mrb[10].mxu0  ;;  %v1030_v19 = vpop.f32.mrb[10].mxu1  ;;  %v1038_v32 = vadd.f32 %v1028_v15, %v752_v28  ;;  %v3710_v7 = vld [vmem:[#allocation7] ss:$16 sps:$4 sm:$0xff]   ;;  %v3730_v13 = vld [vmem:[#allocation7 + $0x44] ss:$16 sps:$4 sm:$0xff]  }
 0x319   :  { %v1043_v20 = vmul.f32 0.5, %v1035_v12  ;;  %v1039_v21 = vadd.f32 %v987_v18, %v753_v8  ;;  %v989_v22 = vpop.f32.mrb[11].mxu0  ;;  %v1032_v23 = vpop.f32.mrb[11].mxu1  ;;  %v1041_v31 = vadd.f32 %v1030_v19, %v755_v25  ;;  %v3712_v8 = vld [vmem:[#allocation7 + $0x8] ss:$16 sps:$4 sm:$0xff]  }
 0x31a   :  { %v1051_v24 = vmul.f32 0.5, %v1036_v17  ;;  %v1040_v26 = vadd.f32 %v989_v22, %v754_v11  ;;  %v1061_v40 = vmul.f32 0.5, %v1038_v32  ;;  %v1042_v43 = vadd.f32 %v1032_v23, %v756_v56  ;;  %v3722_v11 = vld [vmem:[#allocation7 + $0x20] ss:$16 sps:$4 sm:$0xff]   ;;  %v3724_v12 = vld [vmem:[#allocation7 + $0x28] ss:$16 sps:$4 sm:$0xff]  }
 0x31b   :  { %3242 = vtanh.f32 %v1043_v20  ;;  %v1044_v29 = vmul.f32 0.5, %v1039_v21  ;;  %v3732_v14 = vld [vmem:[#allocation7 + $0x4c] ss:$16 sps:$4 sm:$0xff]   ;;  %v3734_v15 = vld [vmem:[#allocation7 + $0x40] ss:$16 sps:$4 sm:$0xff]  }
 0x31c   :  { %3244 = vtanh.f32 %v1051_v24  ;;  %v1052_v30 = vmul.f32 0.5, %v1040_v26  ;;  %v1062_v41 = vmul.f32 0.5, %v1042_v43  ;;  %v3742_v17 = vld [vmem:[#allocation7 + $0x64] ss:$16 sps:$4 sm:$0xff]   ;;  %v3744_v18 = vld [vmem:[#allocation7 + $0x6c] ss:$16 sps:$4 sm:$0xff]  }
 0x31d   :  { %3246 = vtanh.f32 %v1044_v29  ;;  %v3746_v19 = vld [vmem:[#allocation7 + $0x60] ss:$16 sps:$4 sm:$0xff]   ;;  %v3748_v20 = vld [vmem:[#allocation7 + $0x68] ss:$16 sps:$4 sm:$0xff]   ;;  %v3754_v21 = vld [vmem:[#allocation7 + $0x84] ss:$16 sps:$4 sm:$0xff]  }
 0x31e   :  { %3248 = vtanh.f32 %v1037_v27  ;;  %v3756_v22 = vld [vmem:[#allocation7 + $0x8c] ss:$16 sps:$4 sm:$0xff]   ;;  %v3758_v23 = vld [vmem:[#allocation7 + $0x80] ss:$16 sps:$4 sm:$0xff]   ;;  %v3760_v24 = vld [vmem:[#allocation7 + $0x88] ss:$16 sps:$4 sm:$0xff]  }
 0x31f   :  { %3250 = vtanh.f32 %v1052_v30  ;;  %v3766_v25 = vld [vmem:[#allocation7 + $0xa4] ss:$16 sps:$4 sm:$0xff]   ;;  %v3768_v26 = vld [vmem:[#allocation7 + $0xac] ss:$16 sps:$4 sm:$0xff]   ;;  %v3770_v27 = vld [vmem:[#allocation7 + $0xa0] ss:$16 sps:$4 sm:$0xff]  }
 0x320   :  { %3252 = vtanh.f32 %v1041_v31  ;;  %v3772_v28 = vld [vmem:[#allocation7 + $0xa8] ss:$16 sps:$4 sm:$0xff]   ;;  %v3778_v29 = vld [vmem:[#allocation7 + $0xc4] ss:$16 sps:$4 sm:$0xff]   ;;  %v3780_v30 = vld [vmem:[#allocation7 + $0xcc] ss:$16 sps:$4 sm:$0xff]  }
 0x321   :  { %3254 = vtanh.f32 %v1061_v40  ;;  %v3782_v31 = vld [vmem:[#allocation7 + $0xc0] ss:$16 sps:$4 sm:$0xff]   ;;  %v3784_v32 = vld [vmem:[#allocation7 + $0xc8] ss:$16 sps:$4 sm:$0xff]   ;;  %v3790_v56 = vld [vmem:[#allocation7 + $0xe4] ss:$16 sps:$4 sm:$0xff]  }
 0x322   :  { %3256 = vtanh.f32 %v1062_v41  ;;  %v3792_v40 = vld [vmem:[#allocation7 + $0xec] ss:$16 sps:$4 sm:$0xff]   ;;  %v3794_v43 = vld [vmem:[#allocation7 + $0xe0] ss:$16 sps:$4 sm:$0xff]  }
 0x323   :  { %v1093_v41 = vld [vmem:[#allocation4 + $0x68] sm:$0xff] }
 0x325   :  { %v3243_v38 = vpop.eup %3242 }
 0x326   :  { %v3245_v44 = vpop.eup %3244  ;;  %v1047_v46 = vmul.f32 0.5, %v3243_v38  ;;  %v3796_v38 = vld [vmem:[#allocation7 + $0xe8] ss:$16 sps:$4 sm:$0xff]  }
 0x327   :  { %v1055_v45 = vmul.f32 0.5, %v3245_v44  ;;  %v3247_v47 = vpop.eup %3246  ;;  %v1092_v44 = vld [vmem:[#allocation4 + $0x60] sm:$0xff] }
 0x328   :  { %v1049_v48 = vadd.f32 0.5, %v1047_v46  ;;  %v3249_v42 = vpop.eup %3248  ;;  %v1048_v52 = vmul.f32 0.5, %v3247_v47  ;;  %v1094_v46 = vld [vmem:[#allocation4 + $0x70] sm:$0xff]  ;;  %v1097_v47 = vunpack.c.h.bf16 %v1092_v44 }
 0x329   :  { %v1057_v51 = vadd.f32 0.5, %v1055_v45  ;;  %v3251_v49 = vpop.eup %3250  ;;  %v1096_v45 = vunpack.c.l.bf16 %v1092_v44 }
 0x32a   :  { %v1073_v50 = vmul.f32 %v3249_v42, %v1049_v48  ;;  %v1050_v1 = vadd.f32 0.5, %v1048_v52  ;;  %v1056_v4 = vmul.f32 0.5, %v3251_v49  ;;  %v3253_v57 = vpop.eup %3252  ;;  %v1100_v48 = vunpack.c.l.bf16 %v1094_v46 }
 0x32b   :  { %v1071_v53 = vmul.f32 %v1057_v51, %v3657_v54  ;;  %v3255_v55 = vpop.eup %3254  ;;  %v1101_v52 = vunpack.c.h.bf16 %v1094_v46 }
 0x32c   :  { %v1058_v59 = vadd.f32 0.5, %v1056_v4  ;;  %v1074_v61 = vmul.f32 %v3253_v57, %v1050_v1  ;;  %v1065_v33 = vmul.f32 0.5, %v3255_v55  ;;  %v3257_v34 = vpop.eup %3256  ;;  %v1095_v4 = vld [vmem:[#allocation4 + $0x78] sm:$0xff] }
 0x32d   :  { %v3697_v58 = vadd.f32 %v1073_v50, %v1071_v53  ;;  %v1066_v35 = vmul.f32 0.5, %v3257_v34  ;;  %v1098_v50 = vunpack.c.l.bf16 %v1093_v41  ;;  %v1103_v46 = vunpack.c.h.bf16 %v1095_v4 }
 0x32e   :  { %v1072_v62 = vmul.f32 %v1058_v59, %v3661_v60  ;;  %v1067_v54 = vadd.f32 0.5, %v1065_v33  ;;  %v3706_v60 = vld [vmem:[#allocation7 + $0x4] ss:$16 sps:$4 sm:$0xff]  }
 0x32f   :  { %3258 = vtanh.f32 %v3697_v58  ;;  %v1068_v39 = vadd.f32 0.5, %v1066_v35  ;;  %1643 = vmatprep.subr.bf16.mxu0 %v3706_v60  ;;  %v1102_v35 = vunpack.c.l.bf16 %v1095_v4 }
 0x330   :  { %v3701_v63 = vadd.f32 %v1074_v61, %v1072_v62 }
 0x332   :  { %3260 = vtanh.f32 %v3701_v63 }
 0x339   :  { %v3259_v36 = vpop.eup %3258 }
 0x33a   :  { %v1079_v37 = vmul.f32 %v3259_v36, %v1067_v54 }
 0x33c   :  { %1086 = vst [vmem:[#allocation9 + $0x20] sm:$0xff] %v1079_v37  ;;  %v3261_v2 = vpop.eup %3260 }
 0x33d   :  { %v1080_v3 = vmul.f32 %v3261_v2, %v1068_v39  ;;  %v1099_v39 = vunpack.c.h.bf16 %v1093_v41 }
 0x33f   :  { %1087 = vst [vmem:[#allocation9 + $0x28] sm:$0xff] %v1080_v3  ;;  %v1090_v5 = vpack.c.bf16 %v1080_v3, %v1079_v37 }
 0x341   :  { %1329 = vmatmul.mubr.bf16.vlgmr.msra.gmra.mrb[12].mxu0 %v1090_v5  ;;  %1372 = vmatmul.mubr.bf16.vlgmr.msra.gmra.mrb[12].mxu1 %v1090_v5 }
 0x342   :  { %1675 = vmatprep.mubr.bf16.mxu0 %v3438_v0  ;;  %1718 = vmatprep.mubr.bf16.mxu1 %v3438_v0 }
 0x343   :  { %1644 = vmatpush1.bf16.msra.mxu0 %v3710_v7  ;;  %1687 = vmatpush1.bf16.msra.mxu1 %v3712_v8 }
 0x344   :  { %1645 = vmatprep.subr.bf16.mxu0 %v3718_v9  ;;  %1688 = vmatprep.subr.bf16.mxu1 %v3720_v10 }
 0x347   :  { %1646 = vmatpush1.bf16.msra.mxu0 %v3722_v11  ;;  %1689 = vmatpush1.bf16.msra.mxu1 %v3724_v12 }
 0x348   :  { %1647 = vmatprep.subr.bf16.mxu0 %v3730_v13  ;;  %1690 = vmatprep.subr.bf16.mxu1 %v3732_v14 }
 0x34b   :  { %1648 = vmatpush1.bf16.msra.mxu0 %v3734_v15  ;;  %1691 = vmatpush1.bf16.msra.mxu1 %v3736_v16 }
 0x34c   :  { %1649 = vmatprep.subr.bf16.mxu0 %v3742_v17  ;;  %1692 = vmatprep.subr.bf16.mxu1 %v3744_v18 }
 0x34f   :  { %1650 = vmatpush1.bf16.msra.mxu0 %v3746_v19  ;;  %1693 = vmatpush1.bf16.msra.mxu1 %v3748_v20 }
 0x350   :  { %1651 = vmatprep.subr.bf16.mxu0 %v3754_v21  ;;  %1694 = vmatprep.subr.bf16.mxu1 %v3756_v22 }
 0x353   :  { %1652 = vmatpush1.bf16.msra.mxu0 %v3758_v23  ;;  %1695 = vmatpush1.bf16.msra.mxu1 %v3760_v24 }
 0x354   :  { %1653 = vmatprep.subr.bf16.mxu0 %v3766_v25  ;;  %1696 = vmatprep.subr.bf16.mxu1 %v3768_v26 }
 0x357   :  { %1654 = vmatpush1.bf16.msra.mxu0 %v3770_v27  ;;  %1697 = vmatpush1.bf16.msra.mxu1 %v3772_v28 }
 0x358   :  { %1655 = vmatprep.subr.bf16.mxu0 %v3778_v29  ;;  %1698 = vmatprep.subr.bf16.mxu1 %v3780_v30 }
 0x35b   :  { %1656 = vmatpush1.bf16.msra.mxu0 %v3782_v31  ;;  %1699 = vmatpush1.bf16.msra.mxu1 %v3784_v32 }
 0x35c   :  { %1657 = vmatprep.subr.bf16.mxu0 %v3790_v56  ;;  %1700 = vmatprep.subr.bf16.mxu1 %v3792_v40 }
 0x35f   :  { %1658 = vmatpush1.bf16.msra.mxu0 %v3794_v43  ;;  %1701 = vmatpush1.bf16.msra.mxu1 %v3796_v38 }
 0x360   :  { %1990 = vmatprep.subr.bf16.mxu0 %v3706_v60  ;;  %2033 = vmatprep.subr.bf16.mxu1 %v3708_v6 }
 0x414   :  { %v1330_v42 = vpop.f32.mrb[12].mxu0  ;;  %v1373_v51 = vpop.f32.mrb[12].mxu1 }
 0x415   :  { %v1382_v49 = vadd.f32 %v1330_v42, %v1096_v45  ;;  %v1332_v53 = vpop.f32.mrb[13].mxu0  ;;  %v1375_v1 = vpop.f32.mrb[13].mxu1  ;;  %v1384_v37 = vadd.f32 %v1373_v51, %v1098_v50 }
 0x416   :  { %v1383_v57 = vadd.f32 %v1332_v53, %v1097_v47  ;;  %v1334_v59 = vpop.f32.mrb[14].mxu0  ;;  %v1377_v61 = vpop.f32.mrb[14].mxu1  ;;  %v1385_v44 = vadd.f32 %v1375_v1, %v1099_v39 }
 0x417   :  { %v1390_v62 = vmul.f32 0.5, %v1382_v49  ;;  %v1386_v55 = vadd.f32 %v1334_v59, %v1100_v48  ;;  %v1336_v33 = vpop.f32.mrb[15].mxu0  ;;  %v1379_v34 = vpop.f32.mrb[15].mxu1  ;;  %v1388_v5 = vadd.f32 %v1377_v61, %v1102_v35 }
 0x418   :  { %v1398_v54 = vmul.f32 0.5, %v1383_v57  ;;  %v1387_v36 = vadd.f32 %v1336_v33, %v1101_v52  ;;  %v1408_v45 = vmul.f32 0.5, %v1385_v44  ;;  %v1389_v47 = vadd.f32 %v1379_v34, %v1103_v46 }
 0x419   :  { %3262 = vtanh.f32 %v1390_v62  ;;  %v1391_v2 = vmul.f32 0.5, %v1386_v55 }
 0x41a   :  { %3264 = vtanh.f32 %v1398_v54  ;;  %v1399_v3 = vmul.f32 0.5, %v1387_v36  ;;  %v1409_v52 = vmul.f32 0.5, %v1389_v47 }
 0x41b   :  { %3266 = vtanh.f32 %v1391_v2 }
 0x41c   :  { %3268 = vtanh.f32 %v1384_v37 }
 0x41d   :  { %3270 = vtanh.f32 %v1399_v3 }
 0x41e   :  { %3272 = vtanh.f32 %v1388_v5 }
 0x41f   :  { %3274 = vtanh.f32 %v1408_v45 }
 0x420   :  { %3276 = vtanh.f32 %v1409_v52  ;;  %v1440_v52 = vld [vmem:[#allocation4 + $0x88] sm:$0xff] }
 0x423   :  { %v3263_v48 = vpop.eup %3262 }
 0x424   :  { %v3265_v42 = vpop.eup %3264  ;;  %v1394_v49 = vmul.f32 0.5, %v3263_v48 }
 0x425   :  { %v1402_v53 = vmul.f32 0.5, %v3265_v42  ;;  %v3267_v51 = vpop.eup %3266 }
 0x426   :  { %v1396_v41 = vadd.f32 0.5, %v1394_v49  ;;  %v3269_v50 = vpop.eup %3268  ;;  %v1395_v59 = vmul.f32 0.5, %v3267_v51  ;;  %v1441_v49 = vld [vmem:[#allocation4 + $0x90] sm:$0xff] }
 0x427   :  { %v1404_v57 = vadd.f32 0.5, %v1402_v53  ;;  %v3271_v62 = vpop.eup %3270 }
 0x428   :  { %v1420_v61 = vmul.f32 %v3269_v50, %v1396_v41  ;;  %v1397_v4 = vadd.f32 0.5, %v1395_v59  ;;  %v1403_v55 = vmul.f32 0.5, %v3271_v62  ;;  %v3273_v33 = vpop.eup %3272  ;;  %v1447_v41 = vunpack.c.l.bf16 %v1441_v49 }
 0x429   :  { %v1418_v1 = vmul.f32 %v1404_v57, %v3697_v58  ;;  %v3275_v37 = vpop.eup %3274  ;;  %v1448_v59 = vunpack.c.h.bf16 %v1441_v49 }
 0x42a   :  { %v1405_v54 = vadd.f32 0.5, %v1403_v55  ;;  %v1421_v35 = vmul.f32 %v3273_v33, %v1397_v4  ;;  %v1412_v2 = vmul.f32 0.5, %v3275_v37  ;;  %v3277_v3 = vpop.eup %3276  ;;  %v1442_v55 = vld [vmem:[#allocation4 + $0x98] sm:$0xff] }
 0x42b   :  { %v3805_v34 = vadd.f32 %v1420_v61, %v1418_v1  ;;  %v1413_v5 = vmul.f32 0.5, %v3277_v3  ;;  %v1445_v61 = vunpack.c.l.bf16 %v1440_v52  ;;  %v1450_v49 = vunpack.c.h.bf16 %v1442_v55 }
 0x42c   :  { %v1419_v36 = vmul.f32 %v1405_v54, %v3701_v63  ;;  %v1414_v58 = vadd.f32 0.5, %v1412_v2  ;;  %v1439_v63 = vld [vmem:[#allocation4 + $0x80] sm:$0xff] }
 0x42d   :  { %3278 = vtanh.f32 %v3805_v34  ;;  %v1415_v45 = vadd.f32 0.5, %v1413_v5  ;;  %v1443_v53 = vunpack.c.l.bf16 %v1439_v63  ;;  %v1444_v51 = vunpack.c.h.bf16 %v1439_v63 }
 0x42e   :  { %v3809_v39 = vadd.f32 %v1421_v35, %v1419_v36  ;;  %v1449_v5 = vunpack.c.l.bf16 %v1442_v55 }
 0x430   :  { %3280 = vtanh.f32 %v3809_v39 }
 0x437   :  { %v3279_v44 = vpop.eup %3278 }
 0x438   :  { %v1426_v46 = vmul.f32 %v3279_v44, %v1414_v58 }
 0x43a   :  { %1433 = vst [vmem:[#allocation9 + $0x30] sm:$0xff] %v1426_v46  ;;  %v3281_v47 = vpop.eup %3280 }
 0x43b   :  { %v1427_v48 = vmul.f32 %v3281_v47, %v1415_v45  ;;  %v1446_v45 = vunpack.c.h.bf16 %v1440_v52 }
 0x43d   :  { %1434 = vst [vmem:[#allocation9 + $0x38] sm:$0xff] %v1427_v48  ;;  %v1437_v42 = vpack.c.bf16 %v1427_v48, %v1426_v46 }
 0x43f   :  { %1676 = vmatmul.mubr.bf16.vlgmr.msra.gmra.mrb[16].mxu0 %v1437_v42  ;;  %1719 = vmatmul.mubr.bf16.vlgmr.msra.gmra.mrb[16].mxu1 %v1437_v42 }
 0x440   :  { %1991 = vmatpush1.bf16.msra.mxu0 %v3710_v7  ;;  %2034 = vmatpush1.bf16.msra.mxu1 %v3712_v8 }
 0x441   :  { %1992 = vmatprep.subr.bf16.mxu0 %v3718_v9  ;;  %2035 = vmatprep.subr.bf16.mxu1 %v3720_v10 }
 0x442   :  { %2022 = vmatprep.mubr.bf16.mxu0 %v3438_v0  ;;  %2065 = vmatprep.mubr.bf16.mxu1 %v3438_v0 }
 0x444   :  { %1993 = vmatpush1.bf16.msra.mxu0 %v3722_v11  ;;  %2036 = vmatpush1.bf16.msra.mxu1 %v3724_v12 }
 0x445   :  { %1994 = vmatprep.subr.bf16.mxu0 %v3730_v13  ;;  %2037 = vmatprep.subr.bf16.mxu1 %v3732_v14 }
 0x448   :  { %1995 = vmatpush1.bf16.msra.mxu0 %v3734_v15  ;;  %2038 = vmatpush1.bf16.msra.mxu1 %v3736_v16 }
 0x449   :  { %1996 = vmatprep.subr.bf16.mxu0 %v3742_v17  ;;  %2039 = vmatprep.subr.bf16.mxu1 %v3744_v18 }
 0x44c   :  { %1997 = vmatpush1.bf16.msra.mxu0 %v3746_v19  ;;  %2040 = vmatpush1.bf16.msra.mxu1 %v3748_v20 }
 0x44d   :  { %1998 = vmatprep.subr.bf16.mxu0 %v3754_v21  ;;  %2041 = vmatprep.subr.bf16.mxu1 %v3756_v22 }
 0x450   :  { %1999 = vmatpush1.bf16.msra.mxu0 %v3758_v23  ;;  %2042 = vmatpush1.bf16.msra.mxu1 %v3760_v24 }
 0x451   :  { %2000 = vmatprep.subr.bf16.mxu0 %v3766_v25  ;;  %2043 = vmatprep.subr.bf16.mxu1 %v3768_v26 }
 0x454   :  { %2001 = vmatpush1.bf16.msra.mxu0 %v3770_v27  ;;  %2044 = vmatpush1.bf16.msra.mxu1 %v3772_v28 }
 0x455   :  { %2002 = vmatprep.subr.bf16.mxu0 %v3778_v29  ;;  %2045 = vmatprep.subr.bf16.mxu1 %v3780_v30 }
 0x458   :  { %2003 = vmatpush1.bf16.msra.mxu0 %v3782_v31  ;;  %2046 = vmatpush1.bf16.msra.mxu1 %v3784_v32 }
 0x459   :  { %2004 = vmatprep.subr.bf16.mxu0 %v3790_v56  ;;  %2047 = vmatprep.subr.bf16.mxu1 %v3792_v40 }
 0x45c   :  { %2005 = vmatpush1.bf16.msra.mxu0 %v3794_v43  ;;  %2048 = vmatpush1.bf16.msra.mxu1 %v3796_v38 }
 0x45d   :  { %2337 = vmatprep.subr.bf16.mxu0 %v3706_v60  ;;  %2380 = vmatprep.subr.bf16.mxu1 %v3708_v6 }
 0x512   :  { %v1677_v50 = vpop.f32.mrb[16].mxu0  ;;  %v1720_v57 = vpop.f32.mrb[16].mxu1 }
 0x513   :  { %v1729_v62 = vadd.f32 %v1677_v50, %v1443_v53  ;;  %v1679_v1 = vpop.f32.mrb[17].mxu0  ;;  %v1722_v4 = vpop.f32.mrb[17].mxu1  ;;  %v1731_v46 = vadd.f32 %v1720_v57, %v1445_v61 }
 0x514   :  { %v1730_v33 = vadd.f32 %v1679_v1, %v1444_v51  ;;  %v1681_v54 = vpop.f32.mrb[18].mxu0  ;;  %v1724_v35 = vpop.f32.mrb[18].mxu1  ;;  %v1732_v63 = vadd.f32 %v1722_v4, %v1446_v45 }
 0x515   :  { %v1737_v36 = vmul.f32 0.5, %v1729_v62  ;;  %v1733_v37 = vadd.f32 %v1681_v54, %v1447_v41  ;;  %v1683_v2 = vpop.f32.mrb[19].mxu0  ;;  %v1726_v3 = vpop.f32.mrb[19].mxu1  ;;  %v1735_v42 = vadd.f32 %v1724_v35, %v1449_v5 }
 0x516   :  { %v1745_v58 = vmul.f32 0.5, %v1730_v33  ;;  %v1734_v44 = vadd.f32 %v1683_v2, %v1448_v59  ;;  %v1755_v53 = vmul.f32 0.5, %v1732_v63  ;;  %v1736_v51 = vadd.f32 %v1726_v3, %v1450_v49 }
 0x517   :  { %3282 = vtanh.f32 %v1737_v36  ;;  %v1738_v47 = vmul.f32 0.5, %v1733_v37 }
 0x518   :  { %3284 = vtanh.f32 %v1745_v58  ;;  %v1746_v48 = vmul.f32 0.5, %v1734_v44  ;;  %v1756_v59 = vmul.f32 0.5, %v1736_v51 }
 0x519   :  { %3286 = vtanh.f32 %v1738_v47 }
 0x51a   :  { %3288 = vtanh.f32 %v1731_v46 }
 0x51b   :  { %3290 = vtanh.f32 %v1746_v48 }
 0x51c   :  { %3292 = vtanh.f32 %v1735_v42 }
 0x51d   :  { %3294 = vtanh.f32 %v1755_v53 }
 0x51e   :  { %3296 = vtanh.f32 %v1756_v59  ;;  %v1787_v59 = vld [vmem:[#allocation4 + $0xa8] sm:$0xff] }
 0x521   :  { %v3283_v41 = vpop.eup %3282 }
 0x522   :  { %v3285_v50 = vpop.eup %3284  ;;  %v1741_v62 = vmul.f32 0.5, %v3283_v41 }
 0x523   :  { %v1749_v1 = vmul.f32 0.5, %v3285_v50  ;;  %v3287_v57 = vpop.eup %3286 }
 0x524   :  { %v1743_v52 = vadd.f32 0.5, %v1741_v62  ;;  %v3289_v61 = vpop.eup %3288  ;;  %v1742_v54 = vmul.f32 0.5, %v3287_v57  ;;  %v1788_v62 = vld [vmem:[#allocation4 + $0xb0] sm:$0xff] }
 0x525   :  { %v1751_v33 = vadd.f32 0.5, %v1749_v1  ;;  %v3291_v36 = vpop.eup %3290 }
 0x526   :  { %v1767_v35 = vmul.f32 %v3289_v61, %v1743_v52  ;;  %v1744_v55 = vadd.f32 0.5, %v1742_v54  ;;  %v1750_v37 = vmul.f32 0.5, %v3291_v36  ;;  %v3293_v2 = vpop.eup %3292  ;;  %v1794_v52 = vunpack.c.l.bf16 %v1788_v62 }
 0x527   :  { %v1765_v4 = vmul.f32 %v1751_v33, %v3805_v34  ;;  %v3295_v46 = vpop.eup %3294  ;;  %v1795_v54 = vunpack.c.h.bf16 %v1788_v62 }
 0x528   :  { %v1752_v58 = vadd.f32 0.5, %v1750_v37  ;;  %v1768_v5 = vmul.f32 %v3293_v2, %v1744_v55  ;;  %v1759_v47 = vmul.f32 0.5, %v3295_v46  ;;  %v3297_v48 = vpop.eup %3296  ;;  %v1789_v37 = vld [vmem:[#allocation4 + $0xb8] sm:$0xff] }
 0x529   :  { %v3847_v3 = vadd.f32 %v1767_v35, %v1765_v4  ;;  %v1760_v42 = vmul.f32 0.5, %v3297_v48  ;;  %v1792_v35 = vunpack.c.l.bf16 %v1787_v59  ;;  %v1796_v48 = vunpack.c.l.bf16 %v1789_v37 }
 0x52a   :  { %v1766_v44 = vmul.f32 %v1752_v58, %v3809_v39  ;;  %v1761_v34 = vadd.f32 0.5, %v1759_v47  ;;  %v1786_v39 = vld [vmem:[#allocation4 + $0xa0] sm:$0xff] }
 0x52b   :  { %3298 = vtanh.f32 %v3847_v3  ;;  %v1762_v53 = vadd.f32 0.5, %v1760_v42  ;;  %v1790_v1 = vunpack.c.l.bf16 %v1786_v39  ;;  %v1791_v57 = vunpack.c.h.bf16 %v1786_v39 }
 0x52c   :  { %v3851_v45 = vadd.f32 %v1768_v5, %v1766_v44 }
 0x52e   :  { %3300 = vtanh.f32 %v3851_v45 }
 0x535   :  { %v3299_v63 = vpop.eup %3298 }
 0x536   :  { %v1773_v49 = vmul.f32 %v3299_v63, %v1761_v34  ;;  %v1793_v63 = vunpack.c.h.bf16 %v1787_v59 }
 0x538   :  { %1780 = vst [vmem:[#allocation9 + $0x40] sm:$0xff] %v1773_v49  ;;  %v3301_v51 = vpop.eup %3300 }
 0x539   :  { %v1774_v41 = vmul.f32 %v3301_v51, %v1762_v53 }
 0x53b   :  { %1781 = vst [vmem:[#allocation9 + $0x48] sm:$0xff] %v1774_v41  ;;  %v1784_v50 = vpack.c.bf16 %v1774_v41, %v1773_v49 }
 0x53d   :  { %2023 = vmatmul.mubr.bf16.vlgmr.msra.gmra.mrb[20].mxu0 %v1784_v50  ;;  %2066 = vmatmul.mubr.bf16.vlgmr.msra.gmra.mrb[20].mxu1 %v1784_v50  ;;  %v1797_v50 = vunpack.c.h.bf16 %v1789_v37 }
 0x53e   :  { %2338 = vmatpush1.bf16.msra.mxu0 %v3710_v7  ;;  %2381 = vmatpush1.bf16.msra.mxu1 %v3712_v8 }
 0x53f   :  { %2339 = vmatprep.subr.bf16.mxu0 %v3718_v9  ;;  %2382 = vmatprep.subr.bf16.mxu1 %v3720_v10 }
 0x540   :  { %2369 = vmatprep.mubr.bf16.mxu0 %v3438_v0  ;;  %2412 = vmatprep.mubr.bf16.mxu1 %v3438_v0 }
 0x542   :  { %2340 = vmatpush1.bf16.msra.mxu0 %v3722_v11  ;;  %2383 = vmatpush1.bf16.msra.mxu1 %v3724_v12 }
 0x543   :  { %2341 = vmatprep.subr.bf16.mxu0 %v3730_v13  ;;  %2384 = vmatprep.subr.bf16.mxu1 %v3732_v14 }
 0x546   :  { %2342 = vmatpush1.bf16.msra.mxu0 %v3734_v15  ;;  %2385 = vmatpush1.bf16.msra.mxu1 %v3736_v16 }
 0x547   :  { %2343 = vmatprep.subr.bf16.mxu0 %v3742_v17  ;;  %2386 = vmatprep.subr.bf16.mxu1 %v3744_v18 }
 0x54a   :  { %2344 = vmatpush1.bf16.msra.mxu0 %v3746_v19  ;;  %2387 = vmatpush1.bf16.msra.mxu1 %v3748_v20 }
 0x54b   :  { %2345 = vmatprep.subr.bf16.mxu0 %v3754_v21  ;;  %2388 = vmatprep.subr.bf16.mxu1 %v3756_v22 }
 0x54e   :  { %2346 = vmatpush1.bf16.msra.mxu0 %v3758_v23  ;;  %2389 = vmatpush1.bf16.msra.mxu1 %v3760_v24 }
 0x54f   :  { %2347 = vmatprep.subr.bf16.mxu0 %v3766_v25  ;;  %2390 = vmatprep.subr.bf16.mxu1 %v3768_v26 }
 0x552   :  { %2348 = vmatpush1.bf16.msra.mxu0 %v3770_v27  ;;  %2391 = vmatpush1.bf16.msra.mxu1 %v3772_v28 }
 0x553   :  { %2349 = vmatprep.subr.bf16.mxu0 %v3778_v29  ;;  %2392 = vmatprep.subr.bf16.mxu1 %v3780_v30 }
 0x556   :  { %2350 = vmatpush1.bf16.msra.mxu0 %v3782_v31  ;;  %2393 = vmatpush1.bf16.msra.mxu1 %v3784_v32 }
 0x557   :  { %2351 = vmatprep.subr.bf16.mxu0 %v3790_v56  ;;  %2394 = vmatprep.subr.bf16.mxu1 %v3792_v40 }
 0x55a   :  { %2352 = vmatpush1.bf16.msra.mxu0 %v3794_v43  ;;  %2395 = vmatpush1.bf16.msra.mxu1 %v3796_v38 }
 0x55b   :  { %2684 = vmatprep.subr.bf16.mxu0 %v3706_v60  ;;  %2727 = vmatprep.subr.bf16.mxu1 %v3708_v6 }
 0x610   :  { %v2024_v61 = vpop.f32.mrb[20].mxu0  ;;  %v2067_v33 = vpop.f32.mrb[20].mxu1 }
 0x611   :  { %v2076_v36 = vadd.f32 %v2024_v61, %v1790_v1  ;;  %v2026_v4 = vpop.f32.mrb[21].mxu0  ;;  %v2069_v55 = vpop.f32.mrb[21].mxu1  ;;  %v2078_v42 = vadd.f32 %v2067_v33, %v1792_v35 }
 0x612   :  { %v2077_v2 = vadd.f32 %v2026_v4, %v1791_v57  ;;  %v2028_v58 = vpop.f32.mrb[22].mxu0  ;;  %v2071_v5 = vpop.f32.mrb[22].mxu1  ;;  %v2079_v41 = vadd.f32 %v2069_v55, %v1793_v63 }
 0x613   :  { %v2084_v60 = vmul.f32 0.5, %v2076_v36  ;;  %v2080_v44 = vadd.f32 %v2028_v58, %v1794_v52  ;;  %v2030_v6 = vpop.f32.mrb[23].mxu0  ;;  %v2073_v46 = vpop.f32.mrb[23].mxu1  ;;  %v2082_v51 = vadd.f32 %v2071_v5, %v1796_v48 }
 0x614   :  { %v2092_v47 = vmul.f32 0.5, %v2077_v2  ;;  %v2081_v34 = vadd.f32 %v2030_v6, %v1795_v54  ;;  %v2102_v39 = vmul.f32 0.5, %v2079_v41  ;;  %v2083_v62 = vadd.f32 %v2073_v46, %v1797_v50 }
 0x615   :  { %3302 = vtanh.f32 %v2084_v60  ;;  %v2085_v49 = vmul.f32 0.5, %v2080_v44 }
 0x616   :  { %3304 = vtanh.f32 %v2092_v47  ;;  %v2093_v53 = vmul.f32 0.5, %v2081_v34  ;;  %v2103_v54 = vmul.f32 0.5, %v2083_v62 }
 0x617   :  { %3306 = vtanh.f32 %v2085_v49 }
 0x618   :  { %3308 = vtanh.f32 %v2078_v42 }
 0x619   :  { %3310 = vtanh.f32 %v2093_v53 }
 0x61a   :  { %3312 = vtanh.f32 %v2082_v51 }
 0x61b   :  { %3314 = vtanh.f32 %v2102_v39 }
 0x61c   :  { %3316 = vtanh.f32 %v2103_v54 }
 0x61f   :  { %v3303_v1 = vpop.eup %3302 }
 0x620   :  { %v3305_v57 = vpop.eup %3304  ;;  %v2088_v52 = vmul.f32 0.5, %v3303_v1 }
 0x621   :  { %v2096_v61 = vmul.f32 0.5, %v3305_v57  ;;  %v3307_v33 = vpop.eup %3306 }
 0x622   :  { %v2090_v59 = vadd.f32 0.5, %v2088_v52  ;;  %v3309_v36 = vpop.eup %3308  ;;  %v2089_v4 = vmul.f32 0.5, %v3307_v33 }
 0x623   :  { %v2098_v35 = vadd.f32 0.5, %v2096_v61  ;;  %v3311_v2 = vpop.eup %3310 }
 0x624   :  { %v2114_v58 = vmul.f32 %v3309_v36, %v2090_v59  ;;  %v2091_v37 = vadd.f32 0.5, %v2089_v4  ;;  %v2097_v5 = vmul.f32 0.5, %v3311_v2  ;;  %v3313_v60 = vpop.eup %3312 }
 0x625   :  { %v2112_v55 = vmul.f32 %v2098_v35, %v3847_v3  ;;  %v3315_v48 = vpop.eup %3314 }
 0x626   :  { %v2099_v6 = vadd.f32 0.5, %v2097_v5  ;;  %v2115_v46 = vmul.f32 %v3313_v60, %v2091_v37  ;;  %v2106_v42 = vmul.f32 0.5, %v3315_v48  ;;  %v3317_v63 = vpop.eup %3316 }
 0x627   :  { %v3889_v44 = vadd.f32 %v2114_v58, %v2112_v55  ;;  %v2107_v49 = vmul.f32 0.5, %v3317_v63 }
 0x628   :  { %v2113_v47 = vmul.f32 %v2099_v6, %v3851_v45  ;;  %v2108_v3 = vadd.f32 0.5, %v2106_v42 }
 0x629   :  { %3318 = vtanh.f32 %v3889_v44  ;;  %v2109_v41 = vadd.f32 0.5, %v2107_v49 }
 0x62a   :  { %v3893_v34 = vadd.f32 %v2115_v46, %v2113_v47 }
 0x62c   :  { %3320 = vtanh.f32 %v3893_v34 }
 0x633   :  { %v3319_v53 = vpop.eup %3318 }
 0x634   :  { %v2120_v51 = vmul.f32 %v3319_v53, %v2108_v3 }
 0x636   :  { %2127 = vst [vmem:[#allocation9 + $0x50] sm:$0xff] %v2120_v51  ;;  %v3321_v50 = vpop.eup %3320 }
 0x637   :  { %v2121_v39 = vmul.f32 %v3321_v50, %v2109_v41 }
 0x639   :  { %2128 = vst [vmem:[#allocation9 + $0x58] sm:$0xff] %v2121_v39  ;;  %v2131_v62 = vpack.c.bf16 %v2121_v39, %v2120_v51 }
 0x63b   :  { %2370 = vmatmul.mubr.bf16.vlgmr.msra.gmra.mrb[24].mxu0 %v2131_v62  ;;  %2413 = vmatmul.mubr.bf16.vlgmr.msra.gmra.mrb[24].mxu1 %v2131_v62 }
 0x63c   :  { %2685 = vmatpush1.bf16.msra.mxu0 %v3710_v7  ;;  %2728 = vmatpush1.bf16.msra.mxu1 %v3712_v8  ;;  %v2135_v7 = vld [vmem:[#allocation4 + $0xd0] sm:$0xff] }
 0x63d   :  { %2686 = vmatprep.subr.bf16.mxu0 %v3718_v9  ;;  %2729 = vmatprep.subr.bf16.mxu1 %v3720_v10  ;;  %v2134_v9 = vld [vmem:[#allocation4 + $0xc8] sm:$0xff] }
 0x63e   :  { %2716 = vmatprep.mubr.bf16.mxu0 %v3438_v0  ;;  %2759 = vmatprep.mubr.bf16.mxu1 %v3438_v0  ;;  %v2133_v0 = vld [vmem:[#allocation4 + $0xc0] sm:$0xff] }
 0x63f   :  { %v2137_v8 = vunpack.c.l.bf16 %v2133_v0  ;;  %v2138_v10 = vunpack.c.h.bf16 %v2133_v0 }
 0x640   :  { %2687 = vmatpush1.bf16.msra.mxu0 %v3722_v11  ;;  %2730 = vmatpush1.bf16.msra.mxu1 %v3724_v12  ;;  %v2141_v11 = vunpack.c.l.bf16 %v2135_v7 }
 0x641   :  { %2688 = vmatprep.subr.bf16.mxu0 %v3730_v13  ;;  %2731 = vmatprep.subr.bf16.mxu1 %v3732_v14  ;;  %v2142_v14 = vunpack.c.h.bf16 %v2135_v7 }
 0x644   :  { %2689 = vmatpush1.bf16.msra.mxu0 %v3734_v15  ;;  %2732 = vmatpush1.bf16.msra.mxu1 %v3736_v16  ;;  %v2139_v16 = vunpack.c.l.bf16 %v2134_v9 }
 0x645   :  { %2690 = vmatprep.subr.bf16.mxu0 %v3742_v17  ;;  %2733 = vmatprep.subr.bf16.mxu1 %v3744_v18 }
 0x648   :  { %2691 = vmatpush1.bf16.msra.mxu0 %v3746_v19  ;;  %2734 = vmatpush1.bf16.msra.mxu1 %v3748_v20  ;;  %v2136_v19 = vld [vmem:[#allocation4 + $0xd8] sm:$0xff] }
 0x649   :  { %2692 = vmatprep.subr.bf16.mxu0 %v3754_v21  ;;  %2735 = vmatprep.subr.bf16.mxu1 %v3756_v22 }
 0x64c   :  { %2693 = vmatpush1.bf16.msra.mxu0 %v3758_v23  ;;  %2736 = vmatpush1.bf16.msra.mxu1 %v3760_v24 }
 0x64d   :  { %2694 = vmatprep.subr.bf16.mxu0 %v3766_v25  ;;  %2737 = vmatprep.subr.bf16.mxu1 %v3768_v26 }
 0x650   :  { %2695 = vmatpush1.bf16.msra.mxu0 %v3770_v27  ;;  %2738 = vmatpush1.bf16.msra.mxu1 %v3772_v28  ;;  %v2143_v28 = vunpack.c.l.bf16 %v2136_v19 }
 0x651   :  { %2696 = vmatprep.subr.bf16.mxu0 %v3778_v29  ;;  %2739 = vmatprep.subr.bf16.mxu1 %v3780_v30 }
 0x654   :  { %2697 = vmatpush1.bf16.msra.mxu0 %v3782_v31  ;;  %2740 = vmatpush1.bf16.msra.mxu1 %v3784_v32  ;;  %v2140_v31 = vunpack.c.h.bf16 %v2134_v9 }
 0x655   :  { %2698 = vmatprep.subr.bf16.mxu0 %v3790_v56  ;;  %2741 = vmatprep.subr.bf16.mxu1 %v3792_v40 }
 0x658   :  { %2699 = vmatpush1.bf16.msra.mxu0 %v3794_v43  ;;  %2742 = vmatpush1.bf16.msra.mxu1 %v3796_v38  ;;  %v2144_v38 = vunpack.c.h.bf16 %v2136_v19 }
 0x70e   :  { %v2371_v12 = vpop.f32.mrb[24].mxu0  ;;  %v2414_v13 = vpop.f32.mrb[24].mxu1 }
 0x70f   :  { %v2423_v15 = vadd.f32 %v2371_v12, %v2137_v8  ;;  %v2373_v17 = vpop.f32.mrb[25].mxu0  ;;  %v2416_v18 = vpop.f32.mrb[25].mxu1  ;;  %v2425_v30 = vadd.f32 %v2414_v13, %v2139_v16  ;;  %v2482_v8 = vld [vmem:[#allocation4 + $0xf0] sm:$0xff] }
 0x710   :  { %v2424_v20 = vadd.f32 %v2373_v17, %v2138_v10  ;;  %v2375_v21 = vpop.f32.mrb[26].mxu0  ;;  %v2418_v22 = vpop.f32.mrb[26].mxu1  ;;  %v2426_v43 = vadd.f32 %v2416_v18, %v2140_v31  ;;  %v2481_v10 = vld [vmem:[#allocation4 + $0xe8] sm:$0xff]  ;;  %v2488_v12 = vunpack.c.l.bf16 %v2482_v8 }
 0x711   :  { %v2431_v23 = vmul.f32 0.5, %v2423_v15  ;;  %v2427_v24 = vadd.f32 %v2375_v21, %v2141_v11  ;;  %v2377_v25 = vpop.f32.mrb[27].mxu0  ;;  %v2420_v26 = vpop.f32.mrb[27].mxu1  ;;  %v2429_v40 = vadd.f32 %v2418_v22, %v2143_v28  ;;  %v2489_v15 = vunpack.c.h.bf16 %v2482_v8 }
 0x712   :  { %v2439_v27 = vmul.f32 0.5, %v2424_v20  ;;  %v2428_v29 = vadd.f32 %v2377_v25, %v2142_v14  ;;  %v2449_v45 = vmul.f32 0.5, %v2426_v43  ;;  %v2430_v1 = vadd.f32 %v2420_v26, %v2144_v38  ;;  %v2483_v20 = vld [vmem:[#allocation4 + $0xf8] sm:$0xff] }
 0x713   :  { %3322 = vtanh.f32 %v2431_v23  ;;  %v2432_v32 = vmul.f32 0.5, %v2427_v24  ;;  %v2486_v17 = vunpack.c.l.bf16 %v2481_v10 }
 0x714   :  { %3324 = vtanh.f32 %v2439_v27  ;;  %v2440_v56 = vmul.f32 0.5, %v2428_v29  ;;  %v2450_v33 = vmul.f32 0.5, %v2430_v1  ;;  %v2490_v29 = vunpack.c.l.bf16 %v2483_v20 }
 0x715   :  { %3326 = vtanh.f32 %v2432_v32  ;;  %v2487_v32 = vunpack.c.h.bf16 %v2481_v10 }
 0x716   :  { %3328 = vtanh.f32 %v2425_v30 }
 0x717   :  { %3330 = vtanh.f32 %v2440_v56 }
 0x718   :  { %3332 = vtanh.f32 %v2429_v40 }
 0x719   :  { %3334 = vtanh.f32 %v2449_v45  ;;  %v2491_v45 = vunpack.c.h.bf16 %v2483_v20 }
 0x71a   :  { %3336 = vtanh.f32 %v2450_v33 }
 0x71d   :  { %v3323_v57 = vpop.eup %3322 }
 0x71e   :  { %v3325_v52 = vpop.eup %3324  ;;  %v2435_v61 = vmul.f32 0.5, %v3323_v57 }
 0x71f   :  { %v2443_v54 = vmul.f32 0.5, %v3325_v52  ;;  %v3327_v59 = vpop.eup %3326 }
 0x720   :  { %v2437_v36 = vadd.f32 0.5, %v2435_v61  ;;  %v3329_v35 = vpop.eup %3328  ;;  %v2436_v2 = vmul.f32 0.5, %v3327_v59 }
 0x721   :  { %v2445_v4 = vadd.f32 0.5, %v2443_v54  ;;  %v3331_v58 = vpop.eup %3330 }
 0x722   :  { %v2461_v55 = vmul.f32 %v3329_v35, %v2437_v36  ;;  %v2438_v5 = vadd.f32 0.5, %v2436_v2  ;;  %v2444_v60 = vmul.f32 0.5, %v3331_v58  ;;  %v3333_v6 = vpop.eup %3332 }
 0x723   :  { %v2459_v37 = vmul.f32 %v2445_v4, %v3889_v44  ;;  %v3335_v63 = vpop.eup %3334 }
 0x724   :  { %v2446_v47 = vadd.f32 0.5, %v2444_v60  ;;  %v2462_v48 = vmul.f32 %v3333_v6, %v2438_v5  ;;  %v2453_v49 = vmul.f32 0.5, %v3335_v63  ;;  %v3337_v53 = vpop.eup %3336 }
 0x725   :  { %v3929_v46 = vadd.f32 %v2461_v55, %v2459_v37  ;;  %v2454_v51 = vmul.f32 0.5, %v3337_v53 }
 0x726   :  { %v2460_v42 = vmul.f32 %v2446_v47, %v3893_v34  ;;  %v2455_v44 = vadd.f32 0.5, %v2453_v49  ;;  %v2480_v34 = vld [vmem:[#allocation4 + $0xe0] sm:$0xff] }
 0x727   :  { %3338 = vtanh.f32 %v3929_v46  ;;  %v2456_v39 = vadd.f32 0.5, %v2454_v51  ;;  %v2484_v9 = vunpack.c.l.bf16 %v2480_v34  ;;  %v2485_v11 = vunpack.c.h.bf16 %v2480_v34 }
 0x728   :  { %v3933_v3 = vadd.f32 %v2462_v48, %v2460_v42 }
 0x72a   :  { %3340 = vtanh.f32 %v3933_v3 }
 0x731   :  { %v3339_v41 = vpop.eup %3338 }
 0x732   :  { %v2467_v50 = vmul.f32 %v3339_v41, %v2455_v44 }
 0x734   :  { %2474 = vst [vmem:[#allocation9 + $0x60] sm:$0xff] %v2467_v50  ;;  %v3341_v62 = vpop.eup %3340 }
 0x735   :  { %v2468_v0 = vmul.f32 %v3341_v62, %v2456_v39 }
 0x737   :  { %2475 = vst [vmem:[#allocation9 + $0x68] sm:$0xff] %v2468_v0  ;;  %v2478_v7 = vpack.c.bf16 %v2468_v0, %v2467_v50 }
 0x739   :  { %2717 = vmatmul.mubr.bf16.vlgmr.msra.gmra.mrb[28].mxu0 %v2478_v7  ;;  %2760 = vmatmul.mubr.bf16.vlgmr.msra.gmra.mrb[28].mxu1 %v2478_v7 }
 0x80c   :  { %v2718_v13 = vpop.f32.mrb[28].mxu0  ;;  %v2761_v14 = vpop.f32.mrb[28].mxu1 }
 0x80d   :  { %v2770_v16 = vadd.f32 %v2718_v13, %v2484_v9  ;;  %v2720_v18 = vpop.f32.mrb[29].mxu0  ;;  %v2763_v19 = vpop.f32.mrb[29].mxu1  ;;  %v2772_v31 = vadd.f32 %v2761_v14, %v2486_v17 }
 0x80e   :  { %v2771_v21 = vadd.f32 %v2720_v18, %v2485_v11  ;;  %v2722_v22 = vpop.f32.mrb[30].mxu0  ;;  %v2765_v23 = vpop.f32.mrb[30].mxu1  ;;  %v2773_v38 = vadd.f32 %v2763_v19, %v2487_v32 }
 0x80f   :  { %v2778_v24 = vmul.f32 0.5, %v2770_v16  ;;  %v2774_v25 = vadd.f32 %v2722_v22, %v2488_v12  ;;  %v2724_v26 = vpop.f32.mrb[31].mxu0  ;;  %v2767_v27 = vpop.f32.mrb[31].mxu1  ;;  %v2776_v43 = vadd.f32 %v2765_v23, %v2490_v29 }
 0x810   :  { %v2786_v28 = vmul.f32 0.5, %v2771_v21  ;;  %v2775_v30 = vadd.f32 %v2724_v26, %v2489_v15  ;;  %v2796_v1 = vmul.f32 0.5, %v2773_v38  ;;  %v2777_v57 = vadd.f32 %v2767_v27, %v2491_v45 }
 0x811   :  { %3342 = vtanh.f32 %v2778_v24  ;;  %v2779_v56 = vmul.f32 0.5, %v2774_v25 }
 0x812   :  { %3344 = vtanh.f32 %v2786_v28  ;;  %v2787_v40 = vmul.f32 0.5, %v2775_v30  ;;  %v2797_v59 = vmul.f32 0.5, %v2777_v57 }
 0x813   :  { %3346 = vtanh.f32 %v2779_v56 }
 0x814   :  { %3348 = vtanh.f32 %v2772_v31 }
 0x815   :  { %3350 = vtanh.f32 %v2787_v40 }
 0x816   :  { %3352 = vtanh.f32 %v2776_v43 }
 0x817   :  { %3354 = vtanh.f32 %v2796_v1 }
 0x818   :  { %3356 = vtanh.f32 %v2797_v59 }
 0x81b   :  { %v3343_v52 = vpop.eup %3342 }
 0x81c   :  { %v3345_v61 = vpop.eup %3344  ;;  %v2782_v54 = vmul.f32 0.5, %v3343_v52 }
 0x81d   :  { %v2790_v33 = vmul.f32 0.5, %v3345_v61  ;;  %v3347_v36 = vpop.eup %3346 }
 0x81e   :  { %v2784_v35 = vadd.f32 0.5, %v2782_v54  ;;  %v3349_v4 = vpop.eup %3348  ;;  %v2783_v58 = vmul.f32 0.5, %v3347_v36 }
 0x81f   :  { %v2792_v2 = vadd.f32 0.5, %v2790_v33  ;;  %v3351_v55 = vpop.eup %3350 }
 0x820   :  { %v2808_v37 = vmul.f32 %v3349_v4, %v2784_v35  ;;  %v2785_v60 = vadd.f32 0.5, %v2783_v58  ;;  %v2791_v6 = vmul.f32 0.5, %v3351_v55  ;;  %v3353_v47 = vpop.eup %3352 }
 0x821   :  { %v2806_v5 = vmul.f32 %v2792_v2, %v3929_v46  ;;  %v3355_v53 = vpop.eup %3354 }
 0x822   :  { %v2793_v42 = vadd.f32 0.5, %v2791_v6  ;;  %v2809_v63 = vmul.f32 %v3353_v47, %v2785_v60  ;;  %v2800_v51 = vmul.f32 0.5, %v3355_v53  ;;  %v3357_v41 = vpop.eup %3356 }
 0x823   :  { %v2810_v48 = vadd.f32 %v2808_v37, %v2806_v5  ;;  %v2801_v39 = vmul.f32 0.5, %v3357_v41 }
 0x824   :  { %v2807_v49 = vmul.f32 %v2793_v42, %v3933_v3  ;;  %v2802_v50 = vadd.f32 0.5, %v2800_v51 }
 0x825   :  { %3358 = vtanh.f32 %v2810_v48  ;;  %v2803_v46 = vadd.f32 0.5, %v2801_v39 }
 0x826   :  { %v2811_v44 = vadd.f32 %v2809_v63, %v2807_v49 }
 0x828   :  { %3360 = vtanh.f32 %v2811_v44 }
 0x82f   :  { %v3359_v62 = vpop.eup %3358 }
 0x830   :  { %v2814_v0 = vmul.f32 %v3359_v62, %v2802_v50 }
 0x832   :  { %2821 = vst [vmem:[#allocation9 + $0x70] sm:$0xff] %v2814_v0  ;;  %v3361_v7 = vpop.eup %3360 }
 0x833   :  { %v2815_v34 = vmul.f32 %v3361_v7, %v2803_v46 }
 0x835   :  { %2822 = vst [vmem:[#allocation9 + $0x78] sm:$0xff] %v2815_v34 }
 0x836   :  { %3417 = shalt.err (!%p3414_p6)
}
 0x837   :  { %s3418_s10 = scalar_lea.hbm %s3952_s2, 2048 }
 0x838   :  { %p3419_p7 = scmp.ne.s32.totalorder %s3952_s2, %s3418_s10  ;;  %p3422_p8 = scmp.lt.u32.totalorder %s3418_s10, %s3952_s2 }
 0x83a   :  { %p3424_p9 = pnand %p3422_p8, %p3419_p7 }
 0x83c   :  { %3427 = shalt.err (!%p3424_p9)
}
 0x83d   :  { %s3441_s15 = smov 128   ;;  %s3442_s16 = smov 8  }
 0x83e   :  { %2834 = dma.vmem_to_hbm [thread:$0]  %s2829_s6, 2048, %s3952_s2, [#allocation6], %s3441_s15, %s3441_s15, %s3442_s16  }
 0x83f   :  { %3432 = dma.done.wait [#allocation6], 2048  }
 0x840   :  { %3433 = vsyncadd [#allocation6], 4294965248 }
 0x841   :  { %2838 = vsyncpa [#allocation5], 1 }
 0x842   :  { %2839 = vsyncpa [#allocation8], 1 }
 0x843   :  { %2840 = vsyncpa [#allocation6], 1 }

</bundles_post_ra>
